<compile_context>
chip_gen: v7x
topology: tpu7x:2x2x1
jax: 0.10.0
libtpu: 0.0.40
codegen_flags: <defaults>
</compile_context>

<pallas_src>
import functools

import jax
import jax.numpy as jnp
from jax.experimental import pallas as pl
from jax.experimental.pallas import tpu as pltpu

# ----------------------------- config (small) --------------------------------
BATCH = 256          # big enough to exercise 2-way tile split on v7x
INPUT_DIM = 16
ENC_H_DIM = 32       # == DEC_H_DIM so block weights can be stacked
DEC_H_DIM = 32
OUTPUT_DIM = 16
N_ENC_BLK = 2
N_DEC_BLK = 2
N_BLK = N_ENC_BLK + N_DEC_BLK

D_PAD = 128          # lane-dense feature width for hidden/output (zero-padded)


# ------------------------------ Pallas kernel --------------------------------
def _encdec_kernel(n_blk, x_ref, win_ref, wstk_ref, bstk_ref, o_ref):
    """Fused MLP encoder-decoder forward on one [TB, INPUT_DIM] batch tile.

    Hidden/output features are zero-padded to 128 lanes, so the padding
    columns stay exactly zero through the residual-ReLU chain and the math
    matches the un-padded reference up to accumulation order.

    wstk_ref : [n_blk + 1, 128, 128]  (residual-block weights, then w_out)
    bstk_ref : [n_blk + 2, 1, 128]    (b_in, block biases, b_out)
    """
    x = x_ref[...]                                           # [TB, 16]

    # encoder_in_fc : [TB,16] @ [16,128] + [1,128]
    h = jnp.dot(x, win_ref[...], preferred_element_type=jnp.float32) + bstk_ref[0]

    # Encoder + decoder residual blocks (stacked): h = h + relu(h @ W_i + b_i)
    for i in range(n_blk):  # static unroll, n_blk is tiny
        pre = jnp.dot(h, wstk_ref[i],
                      preferred_element_type=jnp.float32) + bstk_ref[1 + i]
        h = h + jnp.maximum(pre, 0.0)

    # decoder output projection (lane-dense [TB, 128] result, padding cols = 0)
    out = jnp.dot(h, wstk_ref[n_blk],
                  preferred_element_type=jnp.float32) + bstk_ref[1 + n_blk]
    o_ref[...] = out.astype(o_ref.dtype)                     # unmasked vst


# --------------------------- one-time param prep ------------------------------
def _pad2d(a, rows, cols):
    out = jnp.zeros((rows, cols), jnp.float32)
    return out.at[: a.shape[0], : a.shape[1]].set(a)


def prepare_params(params):
    """Transpose (PyTorch [out,in] -> [in,out]), stack all grid-invariant
    weights/biases into 3 slabs, and zero-pad to 128 lanes.  Call ONCE."""
    (w_in, b_in, enc_w, enc_b, dec_w, dec_b, w_out, b_out) = params

    # encoder_in_fc weight: [in=16, 128]  (no row padding -> contract over 16)
    w_in_p = _pad2d(jnp.transpose(w_in), INPUT_DIM, D_PAD)

    # residual-block weights + decoder output weight -> [N_BLK + 1, 128, 128]
    blk_w = jnp.concatenate([enc_w, dec_w], axis=0)              # [n,H,H] (out,in)
    blk_w_t = jnp.transpose(blk_w, (0, 2, 1))                    # [n,H,H] (in,out)
    w_stack = jnp.zeros((N_BLK + 1, D_PAD, D_PAD), jnp.float32)
    w_stack = w_stack.at[:N_BLK, :ENC_H_DIM, :ENC_H_DIM].set(blk_w_t)
    w_stack = w_stack.at[N_BLK, :DEC_H_DIM, :OUTPUT_DIM].set(jnp.transpose(w_out))

    # all biases -> [N_BLK + 2, 1, 128]  (b_in, block biases, b_out)
    b_stack = jnp.zeros((N_BLK + 2, 1, D_PAD), jnp.float32)
    b_stack = b_stack.at[0, 0, :ENC_H_DIM].set(b_in)
    b_stack = b_stack.at[1:1 + N_BLK, 0, :ENC_H_DIM].set(
        jnp.concatenate([enc_b, dec_b], axis=0))
    b_stack = b_stack.at[1 + N_BLK, 0, :OUTPUT_DIM].set(b_out)

    return (w_in_p, w_stack, b_stack)


# ------------------------------ grid selection --------------------------------
def _tensorcores_per_chip():
    """v7x has 2 TensorCores per chip; v5e/v6e have 1.  Safe fallback = 1."""
    try:
        kind = jax.devices()[0].device_kind.lower()
    except Exception:
        return 1
    return 2 if "v7" in kind else 1


def _pick_batch_tiling(batch):
    n_tiles = _tensorcores_per_chip()
    if n_tiles > 1 and batch % n_tiles == 0 and (batch // n_tiles) % 8 == 0:
        return n_tiles, batch // n_tiles     # one tile per TensorCore (v7x)
    return 1, batch                          # single grid step (v5e / v6e)


# --------------------------------- forward ------------------------------------
def encoder_decoder_forward(x, padded_params):
    """One pallas_call; weights are VMEM-resident across grid steps.

    Returns the lane-dense [batch, 128] output slab (columns >= OUTPUT_DIM are
    exactly zero).  Consumers slice [:, :OUTPUT_DIM] if they need the narrow
    view; keeping the slice out of this path avoids an extra XLA launch.
    """
    (w_in_p, w_stack, b_stack) = padded_params
    batch = x.shape[0]
    n_tiles, tb = _pick_batch_tiling(batch)

    kernel = functools.partial(_encdec_kernel, N_BLK)

    out = pl.pallas_call(
        kernel,
        out_shape=jax.ShapeDtypeStruct((batch, D_PAD), jnp.float32),
        grid=(n_tiles,),
        in_specs=[
            # x tile: last block dim == full array dim (16) -> legal, no pad.
            pl.BlockSpec((tb, INPUT_DIM), lambda i: (i, 0)),
            # grid-invariant operands (index_map -> 0): fetched once, stay
            # resident across grid steps.
            pl.BlockSpec((INPUT_DIM, D_PAD), lambda i: (0, 0)),
            pl.BlockSpec((N_BLK + 1, D_PAD, D_PAD), lambda i: (0, 0, 0)),
            pl.BlockSpec((N_BLK + 2, 1, D_PAD), lambda i: (0, 0, 0)),
        ],
        out_specs=pl.BlockSpec((tb, D_PAD), lambda i: (i, 0)),
        compiler_params=pltpu.CompilerParams(
            dimension_semantics=("parallel",)),     # v7x: one tile per TC
    )(x, w_in_p, w_stack, b_stack)

    return out


# --------------------------- deterministic params -----------------------------
def init_params(key):
    ks = jax.random.split(key, 8)

    def lin(k, out_dim, in_dim):
        scale = 1.0 / jnp.sqrt(in_dim)
        kw, kb = jax.random.split(k)
        w = jax.random.uniform(kw, (out_dim, in_dim), jnp.float32, -scale, scale)
        b = jax.random.uniform(kb, (out_dim,), jnp.float32, -scale, scale)
        return w, b

    w_in, b_in = lin(ks[0], ENC_H_DIM, INPUT_DIM)

    enc_w, enc_b = [], []
    for i in range(N_ENC_BLK):
        w, b = lin(jax.random.fold_in(ks[1], i), ENC_H_DIM, ENC_H_DIM)
        enc_w.append(w)
        enc_b.append(b)
    enc_w = jnp.stack(enc_w)
    enc_b = jnp.stack(enc_b)

    dec_w, dec_b = [], []
    for i in range(N_DEC_BLK):
        w, b = lin(jax.random.fold_in(ks[2], i), DEC_H_DIM, DEC_H_DIM)
        dec_w.append(w)
        dec_b.append(b)
    dec_w = jnp.stack(dec_w)
    dec_b = jnp.stack(dec_b)

    w_out, b_out = lin(ks[3], OUTPUT_DIM, DEC_H_DIM)
    return (w_in, b_in, enc_w, enc_b, dec_w, dec_b, w_out, b_out)


# ------------------------------ pure-JAX reference ----------------------------
def reference_forward(x, params):
    (w_in, b_in, enc_w, enc_b, dec_w, dec_b, w_out, b_out) = params
    h = x @ w_in.T + b_in
    for i in range(N_ENC_BLK):
        h = h + jax.nn.relu(h @ enc_w[i].T + enc_b[i])
    for i in range(N_DEC_BLK):
        h = h + jax.nn.relu(h @ dec_w[i].T + dec_b[i])
    return h @ w_out.T + b_out


# ---------------------------------- main --------------------------------------
if __name__ == "__main__":
    key = jax.random.PRNGKey(0)
    kx, kp = jax.random.split(key)

    x = jax.random.normal(kx, (BATCH, INPUT_DIM), jnp.float32)
    params = init_params(kp)

    # One-time param prep (transpose / stack / pad) — out of the per-call path.
    padded_params = prepare_params(params)
    padded_params = jax.tree_util.tree_map(jax.block_until_ready, padded_params)

    out_slab = encoder_decoder_forward(x, padded_params)      # [BATCH, 128]
    out_slab = jax.block_until_ready(out_slab)

    # Consumer-side slice (done once here for the correctness check only).
    out = out_slab[:, :OUTPUT_DIM]
    ref = reference_forward(x, params)

    assert out_slab.shape == (BATCH, D_PAD), out_slab.shape
    assert out.shape == (BATCH, OUTPUT_DIM), out.shape
    # NOTE: both sides use the default (bf16 multi-pass) MXU precision, so
    # 1e-5 holds; pin precision on both if bit-level stability is ever needed.
    assert jnp.allclose(out, ref, atol=1e-5, rtol=1e-5), (
        float(jnp.max(jnp.abs(out - ref))))
    # Padding lanes of the slab must be exactly zero (zero-padded weights/bias).
    assert bool(jnp.all(out_slab[:, OUTPUT_DIM:] == 0.0))

    print("KERNEL_OK")
</pallas_src>

<mosaic_0001>
module attributes {stable_mosaic.version = 11 : i64} {
  func.func @_encdec_kernel(%arg0: i32, %arg1: memref<256x16xf32, #tpu.memory_space<vmem>>, %arg2: memref<16x128xf32, #tpu.memory_space<vmem>>, %arg3: memref<5x128x128xf32, #tpu.memory_space<vmem>>, %arg4: memref<6x1x128xf32, #tpu.memory_space<vmem>>, %arg5: memref<256x128xf32, #tpu.memory_space<vmem>>) attributes {dimension_semantics = [#tpu.dimension_semantics<parallel>], iteration_bounds = array<i64: 1>, scalar_prefetch = 0 : i64, scratch_operands = 0 : i64, tpu.core_type = #tpu.core_type<tc>, window_params = [{transform_indices = @transform_0, window_bounds = array<i64: 256, 16>}, {pipeline_mode = #tpu.pipeline_mode<synchronous>, transform_indices = @transform_1, window_bounds = array<i64: 16, 128>}, {pipeline_mode = #tpu.pipeline_mode<synchronous>, transform_indices = @transform_2, window_bounds = array<i64: 5, 128, 128>}, {pipeline_mode = #tpu.pipeline_mode<synchronous>, transform_indices = @transform_3, window_bounds = array<i64: 6, 1, 128>}, {transform_indices = @transform_4, window_bounds = array<i64: 256, 128>}]} {
    %c0 = arith.constant 0 : index
    %c0_0 = arith.constant 0 : index
    %0 = vector.load %arg1[%c0, %c0_0] : memref<256x16xf32, #tpu.memory_space<vmem>>, vector<256x16xf32>
    %c0_1 = arith.constant 0 : index
    %c0_2 = arith.constant 0 : index
    %1 = vector.load %arg2[%c0_1, %c0_2] : memref<16x128xf32, #tpu.memory_space<vmem>>, vector<16x128xf32>
    %cst = arith.constant dense<0.000000e+00> : vector<256x128xf32>
    %2 = tpu.matmul %0, %1, %cst {dimension_numbers = #tpu.dot_dimension_numbers<[1], [0], [0], [1], [0, 0, 1, 1], [], []>} : vector<256x16xf32>, vector<16x128xf32>, vector<256x128xf32> -> vector<256x128xf32>
    %c0_3 = arith.constant 0 : index
    %c0_4 = arith.constant 0 : index
    %c0_5 = arith.constant 0 : index
    %3 = vector.load %arg4[%c0_3, %c0_4, %c0_5] : memref<6x1x128xf32, #tpu.memory_space<vmem>>, vector<1x1x128xf32>
    %4 = vector.shape_cast %3 : vector<1x1x128xf32> to vector<1x128xf32>
    %5 = vector.broadcast %4 : vector<1x128xf32> to vector<256x128xf32>
    %6 = arith.addf %2, %5 : vector<256x128xf32>
    %c0_6 = arith.constant 0 : index
    %c0_7 = arith.constant 0 : index
    %c0_8 = arith.constant 0 : index
    %7 = vector.load %arg3[%c0_6, %c0_7, %c0_8] : memref<5x128x128xf32, #tpu.memory_space<vmem>>, vector<1x128x128xf32>
    %8 = vector.shape_cast %7 : vector<1x128x128xf32> to vector<128x128xf32>
    %cst_9 = arith.constant dense<0.000000e+00> : vector<256x128xf32>
    %9 = tpu.matmul %6, %8, %cst_9 {dimension_numbers = #tpu.dot_dimension_numbers<[1], [0], [0], [1], [0, 0, 1, 1], [], []>} : vector<256x128xf32>, vector<128x128xf32>, vector<256x128xf32> -> vector<256x128xf32>
    %c1 = arith.constant 1 : index
    %c0_10 = arith.constant 0 : index
    %c0_11 = arith.constant 0 : index
    %10 = vector.load %arg4[%c1, %c0_10, %c0_11] : memref<6x1x128xf32, #tpu.memory_space<vmem>>, vector<1x1x128xf32>
    %11 = vector.shape_cast %10 : vector<1x1x128xf32> to vector<1x128xf32>
    %12 = vector.broadcast %11 : vector<1x128xf32> to vector<256x128xf32>
    %13 = arith.addf %9, %12 : vector<256x128xf32>
    %cst_12 = arith.constant 0.000000e+00 : f32
    %14 = vector.broadcast %cst_12 : f32 to vector<256x128xf32>
    %15 = arith.maximumf %13, %14 : vector<256x128xf32>
    %16 = arith.addf %6, %15 : vector<256x128xf32>
    %c1_13 = arith.constant 1 : index
    %c0_14 = arith.constant 0 : index
    %c0_15 = arith.constant 0 : index
    %17 = vector.load %arg3[%c1_13, %c0_14, %c0_15] : memref<5x128x128xf32, #tpu.memory_space<vmem>>, vector<1x128x128xf32>
    %18 = vector.shape_cast %17 : vector<1x128x128xf32> to vector<128x128xf32>
    %cst_16 = arith.constant dense<0.000000e+00> : vector<256x128xf32>
    %19 = tpu.matmul %16, %18, %cst_16 {dimension_numbers = #tpu.dot_dimension_numbers<[1], [0], [0], [1], [0, 0, 1, 1], [], []>} : vector<256x128xf32>, vector<128x128xf32>, vector<256x128xf32> -> vector<256x128xf32>
    %c2 = arith.constant 2 : index
    %c0_17 = arith.constant 0 : index
    %c0_18 = arith.constant 0 : index
    %20 = vector.load %arg4[%c2, %c0_17, %c0_18] : memref<6x1x128xf32, #tpu.memory_space<vmem>>, vector<1x1x128xf32>
    %21 = vector.shape_cast %20 : vector<1x1x128xf32> to vector<1x128xf32>
    %22 = vector.broadcast %21 : vector<1x128xf32> to vector<256x128xf32>
    %23 = arith.addf %19, %22 : vector<256x128xf32>
    %cst_19 = arith.constant 0.000000e+00 : f32
    %24 = vector.broadcast %cst_19 : f32 to vector<256x128xf32>
    %25 = arith.maximumf %23, %24 : vector<256x128xf32>
    %26 = arith.addf %16, %25 : vector<256x128xf32>
    %c2_20 = arith.constant 2 : index
    %c0_21 = arith.constant 0 : index
    %c0_22 = arith.constant 0 : index
    %27 = vector.load %arg3[%c2_20, %c0_21, %c0_22] : memref<5x128x128xf32, #tpu.memory_space<vmem>>, vector<1x128x128xf32>
    %28 = vector.shape_cast %27 : vector<1x128x128xf32> to vector<128x128xf32>
    %cst_23 = arith.constant dense<0.000000e+00> : vector<256x128xf32>
    %29 = tpu.matmul %26, %28, %cst_23 {dimension_numbers = #tpu.dot_dimension_numbers<[1], [0], [0], [1], [0, 0, 1, 1], [], []>} : vector<256x128xf32>, vector<128x128xf32>, vector<256x128xf32> -> vector<256x128xf32>
    %c3 = arith.constant 3 : index
    %c0_24 = arith.constant 0 : index
    %c0_25 = arith.constant 0 : index
    %30 = vector.load %arg4[%c3, %c0_24, %c0_25] : memref<6x1x128xf32, #tpu.memory_space<vmem>>, vector<1x1x128xf32>
    %31 = vector.shape_cast %30 : vector<1x1x128xf32> to vector<1x128xf32>
    %32 = vector.broadcast %31 : vector<1x128xf32> to vector<256x128xf32>
    %33 = arith.addf %29, %32 : vector<256x128xf32>
    %cst_26 = arith.constant 0.000000e+00 : f32
    %34 = vector.broadcast %cst_26 : f32 to vector<256x128xf32>
    %35 = arith.maximumf %33, %34 : vector<256x128xf32>
    %36 = arith.addf %26, %35 : vector<256x128xf32>
    %c3_27 = arith.constant 3 : index
    %c0_28 = arith.constant 0 : index
    %c0_29 = arith.constant 0 : index
    %37 = vector.load %arg3[%c3_27, %c0_28, %c0_29] : memref<5x128x128xf32, #tpu.memory_space<vmem>>, vector<1x128x128xf32>
    %38 = vector.shape_cast %37 : vector<1x128x128xf32> to vector<128x128xf32>
    %cst_30 = arith.constant dense<0.000000e+00> : vector<256x128xf32>
    %39 = tpu.matmul %36, %38, %cst_30 {dimension_numbers = #tpu.dot_dimension_numbers<[1], [0], [0], [1], [0, 0, 1, 1], [], []>} : vector<256x128xf32>, vector<128x128xf32>, vector<256x128xf32> -> vector<256x128xf32>
    %c4 = arith.constant 4 : index
    %c0_31 = arith.constant 0 : index
    %c0_32 = arith.constant 0 : index
    %40 = vector.load %arg4[%c4, %c0_31, %c0_32] : memref<6x1x128xf32, #tpu.memory_space<vmem>>, vector<1x1x128xf32>
    %41 = vector.shape_cast %40 : vector<1x1x128xf32> to vector<1x128xf32>
    %42 = vector.broadcast %41 : vector<1x128xf32> to vector<256x128xf32>
    %43 = arith.addf %39, %42 : vector<256x128xf32>
    %cst_33 = arith.constant 0.000000e+00 : f32
    %44 = vector.broadcast %cst_33 : f32 to vector<256x128xf32>
    %45 = arith.maximumf %43, %44 : vector<256x128xf32>
    %46 = arith.addf %36, %45 : vector<256x128xf32>
    %c4_34 = arith.constant 4 : index
    %c0_35 = arith.constant 0 : index
    %c0_36 = arith.constant 0 : index
    %47 = vector.load %arg3[%c4_34, %c0_35, %c0_36] : memref<5x128x128xf32, #tpu.memory_space<vmem>>, vector<1x128x128xf32>
    %48 = vector.shape_cast %47 : vector<1x128x128xf32> to vector<128x128xf32>
    %cst_37 = arith.constant dense<0.000000e+00> : vector<256x128xf32>
    %49 = tpu.matmul %46, %48, %cst_37 {dimension_numbers = #tpu.dot_dimension_numbers<[1], [0], [0], [1], [0, 0, 1, 1], [], []>} : vector<256x128xf32>, vector<128x128xf32>, vector<256x128xf32> -> vector<256x128xf32>
    %c5 = arith.constant 5 : index
    %c0_38 = arith.constant 0 : index
    %c0_39 = arith.constant 0 : index
    %50 = vector.load %arg4[%c5, %c0_38, %c0_39] : memref<6x1x128xf32, #tpu.memory_space<vmem>>, vector<1x1x128xf32>
    %51 = vector.shape_cast %50 : vector<1x1x128xf32> to vector<1x128xf32>
    %52 = vector.broadcast %51 : vector<1x128xf32> to vector<256x128xf32>
    %53 = arith.addf %49, %52 : vector<256x128xf32>
    %c0_40 = arith.constant 0 : index
    %c0_41 = arith.constant 0 : index
    %54 = vector.load %arg5[%c0_40, %c0_41] : memref<256x128xf32, #tpu.memory_space<vmem>>, vector<256x128xf32>
    tpu.vector_store %arg5[%c0_40, %c0_41], %53 {strides = array<i32>} : memref<256x128xf32, #tpu.memory_space<vmem>>, vector<256x128xf32>,
    return
  }
  func.func @transform_0(%arg0: i32) -> (i32, i32) {
    %c0_i32 = arith.constant 0 : i32
    %c0_i32_0 = arith.constant 0 : i32
    return %arg0, %c0_i32 : i32, i32
  }
  func.func @transform_1(%arg0: i32) -> (i32, i32) {
    %c0_i32 = arith.constant 0 : i32
    %c0_i32_0 = arith.constant 0 : i32
    %c0_i32_1 = arith.constant 0 : i32
    return %c0_i32, %c0_i32_0 : i32, i32
  }
  func.func @transform_2(%arg0: i32) -> (i32, i32, i32) {
    %c0_i32 = arith.constant 0 : i32
    %c0_i32_0 = arith.constant 0 : i32
    %c0_i32_1 = arith.constant 0 : i32
    %c0_i32_2 = arith.constant 0 : i32
    return %c0_i32, %c0_i32_0, %c0_i32_1 : i32, i32, i32
  }
  func.func @transform_3(%arg0: i32) -> (i32, i32, i32) {
    %c0_i32 = arith.constant 0 : i32
    %c0_i32_0 = arith.constant 0 : i32
    %c0_i32_1 = arith.constant 0 : i32
    %c0_i32_2 = arith.constant 0 : i32
    return %c0_i32, %c0_i32_0, %c0_i32_1 : i32, i32, i32
  }
  func.func @transform_4(%arg0: i32) -> (i32, i32) {
    %c0_i32 = arith.constant 0 : i32
    %c0_i32_0 = arith.constant 0 : i32
    return %arg0, %c0_i32 : i32, i32
  }
}

</mosaic_0001>

<bundles_post_ra>
// kernel: tpu_custom_call.1
= control target key start
LH: loop header
LB: loop body
LE: loop exit
PB: predicated region body
PF: predicated region fallthrough
CT: control target
= control target key end

     0   :  { %9 = vsyncpa [#allocation3], 0  ;;  %s3901_s0 = inlined_call_operand.vmem [shape: f32[256,16], index: 0, kind: input, shape index: {}]   ;;  %s3902_s1 = inlined_call_operand.vmem [shape: f32[16,128], index: 1, kind: input, shape index: {}]   ;;  %s3903_s2 = inlined_call_operand.hbm [shape: f32[5,128,128], index: 2, kind: input, shape index: {}]   ;;  %s3904_s3 = inlined_call_operand.vmem [shape: f32[6,1,128], index: 3, kind: input, shape index: {}]   ;;  %s3905_s4 = inlined_call_operand.hbm [shape: f32[256,128], index: 4, kind: output, shape index: {}]  }
   0x1   :  { %10 = vsyncpa [#allocation4], 0  ;;  %s2950_s15 = smov [#allocation2]   ;;  %s2902_s19 = scalar_lea.hbm %s3903_s2, 10240 }
   0x2   :  { %s20_s16 = sshll.u32 %s2950_s15, 4  ;;  %p2903_p0 = scmp.ne.s32.totalorder %s3903_s2, %s2902_s19  ;;  %s21_s16 = int_to_ptr.vmem [resolvable:$true] %s20_s16 }
   0x3   :  { %p2906_p1 = scmp.lt.u32.totalorder %s2902_s19, %s3903_s2 }
   0x5   :  { %p2908_p2 = pnand %p2906_p1, %p2903_p0 }
   0x7   :  { %2911 = shalt.err (!%p2908_p2)
}
   0x8   :  { %s2912_s24 = scalar_lea.vmem %s21_s16, 10240  ;;  %p2917_p4 = scmp.lt.s32.totalorder %s21_s16, %s21_s16 }
   0x9   :  { %p2913_p3 = scmp.ne.s32.totalorder %s21_s16, %s2912_s24  ;;  %p2918_p5 = scmp.lt.s32.totalorder %s2912_s24, %s2912_s24 }
   0xb   :  { %p2919_p6 = por %p2918_p5, %p2917_p4 }
   0xd   :  { %p2920_p7 = pnand %p2919_p6, %p2913_p3 }
   0xf   :  { %2923 = shalt.err (!%p2920_p7)
}
  0x10   :  { %s2951_s25 = smov 128   ;;  %s2952_s26 = smov 8  }
  0x11   :  { %26 = dma.hbm_to_vmem [thread:$0]  %s3903_s2, 10240, %s21_s16, [#allocation3], %s2951_s25, %s2951_s25, %s2952_s26  }
  0x12   :  { %2946 = dma.done.wait [#allocation3], 10240  }
  0x13   :  { %2947 = vsyncadd [#allocation3], 4294957056  ;;  %vm73_vm0 = vcmask 130048   ;;  %v64_v0 = vld [vmem:[%s3902_s1] sm:$0xff]  ;;  %v65_v1 = vld [vmem:[%s3902_s1 + $0x8] sm:$0xff] }
  0x14   :  { %v32_v2 = vld [vmem:[%s3901_s0] sm:$0xff]  ;;  %v2718_v3 = vpack.c.bf16 %v65_v1, %v64_v0  ;;  %v33_v4 = vld [vmem:[%s3901_s0 + $0x8] sm:$0xff]  ;;  %v34_v5 = vld [vmem:[%s3901_s0 + $0x10] sm:$0xff] }
  0x15   :  { %2270 = vmatprep.mubr.msk.f32.mxu0 %vm73_vm0, %v32_v2  ;;  %v35_v6 = vld [vmem:[%s3901_s0 + $0x18] sm:$0xff]  ;;  %v36_v7 = vld [vmem:[%s3901_s0 + $0x20] sm:$0xff]  ;;  %v396_v9 = vld [vmem:[#allocation2 + $0x8] sm:$0xff] }
  0x16   :  { %2719 = vmatprep.subr.bf16.mxu0 %v2718_v3  ;;  %v395_v8 = vld [vmem:[#allocation2] sm:$0xff]  ;;  %v37_v10 = vld [vmem:[%s3901_s0 + $0x28] sm:$0xff]  ;;  %v397_v12 = vld [vmem:[#allocation2 + $0x10] sm:$0xff] }
  0x17   :  { %2721 = vmatpush3.bf16.msra.mxu0 %v2718_v3  ;;  %v2722_v11 = vpack.c.bf16 %v396_v9, %v395_v8  ;;  %v398_v13 = vld [vmem:[#allocation2 + $0x18] sm:$0xff]  ;;  %v38_v14 = vld [vmem:[%s3901_s0 + $0x30] sm:$0xff]  ;;  %v399_v16 = vld [vmem:[#allocation2 + $0x20] sm:$0xff] }
  0x18   :  { %v2726_v15 = vpack.c.bf16 %v398_v13, %v397_v12  ;;  %v400_v17 = vld [vmem:[#allocation2 + $0x28] sm:$0xff]  ;;  %v39_v18 = vld [vmem:[%s3901_s0 + $0x38] sm:$0xff]  ;;  %v40_v20 = vld [vmem:[%s3901_s0 + $0x40] sm:$0xff] }
  0x19   :  { %2723 = vmatprep.subr.bf16.mxu1 %v2722_v11  ;;  %v2730_v19 = vpack.c.bf16 %v400_v17, %v399_v16  ;;  %v401_v21 = vld [vmem:[#allocation2 + $0x30] sm:$0xff]  ;;  %v402_v22 = vld [vmem:[#allocation2 + $0x38] sm:$0xff]  ;;  %v41_v23 = vld [vmem:[%s3901_s0 + $0x48] sm:$0xff] }
  0x1a   :  { %2271 = vmatmul.mubr.msk.f32.vlgmr.msra.gmra.mrb[0].mxu0 %vm73_vm0, %v33_v4  ;;  %2725 = vmatpush3.bf16.msra.mxu1 %v2722_v11  ;;  %v2734_v24 = vpack.c.bf16 %v402_v22, %v401_v21  ;;  %v42_v25 = vld [vmem:[%s3901_s0 + $0x50] sm:$0xff]  ;;  %v403_v26 = vld [vmem:[#allocation2 + $0x40] sm:$0xff]  ;;  %v404_v27 = vld [vmem:[#allocation2 + $0x48] sm:$0xff] }
  0x1b   :  { %2273 = vmatprep.mubr.msk.f32.mxu0 %vm73_vm0, %v34_v5  ;;  %2727 = vmatprep.subr.bf16.mxu1 %v2726_v15  ;;  %v43_v28 = vld [vmem:[%s3901_s0 + $0x58] sm:$0xff]  ;;  %v2738_v29 = vpack.c.bf16 %v404_v27, %v403_v26  ;;  %v44_v30 = vld [vmem:[%s3901_s0 + $0x60] sm:$0xff]  ;;  %v405_v31 = vld [vmem:[#allocation2 + $0x50] sm:$0xff] }
  0x1c   :  { %v406_v32 = vld [vmem:[#allocation2 + $0x58] sm:$0xff]  ;;  %v45_v33 = vld [vmem:[%s3901_s0 + $0x68] sm:$0xff]  ;;  %v46_v35 = vld [vmem:[%s3901_s0 + $0x70] sm:$0xff] }
  0x1d   :  { %v2742_v34 = vpack.c.bf16 %v406_v32, %v405_v31  ;;  %v407_v36 = vld [vmem:[#allocation2 + $0x60] sm:$0xff]  ;;  %v408_v37 = vld [vmem:[#allocation2 + $0x68] sm:$0xff]  ;;  %v47_v38 = vld [vmem:[%s3901_s0 + $0x78] sm:$0xff] }
  0x1e   :  { %2274 = vmatmul.mubr.msk.f32.gmra.mrb[2].mxu0 %vm73_vm0, %v35_v6  ;;  %2729 = vmatpush3.bf16.msra.mxu1 %v2726_v15  ;;  %v2746_v39 = vpack.c.bf16 %v408_v37, %v407_v36  ;;  %v48_v40 = vld [vmem:[%s3901_s0 + $0x80] sm:$0xff]  ;;  %v49_v41 = vld [vmem:[%s3901_s0 + $0x88] sm:$0xff]  ;;  %v50_v42 = vld [vmem:[%s3901_s0 + $0x90] sm:$0xff] }
  0x1f   :  { %2276 = vmatprep.mubr.msk.f32.mxu0 %vm73_vm0, %v36_v7  ;;  %2731 = vmatprep.subr.bf16.mxu1 %v2730_v19  ;;  %v51_v43 = vld [vmem:[%s3901_s0 + $0x98] sm:$0xff]  ;;  %v52_v44 = vld [vmem:[%s3901_s0 + $0xa0] sm:$0xff]  ;;  %v53_v45 = vld [vmem:[%s3901_s0 + $0xa8] sm:$0xff] }
  0x20   :  { %v54_v46 = vld [vmem:[%s3901_s0 + $0xb0] sm:$0xff]  ;;  %v55_v47 = vld [vmem:[%s3901_s0 + $0xb8] sm:$0xff]  ;;  %v56_v48 = vld [vmem:[%s3901_s0 + $0xc0] sm:$0xff] }
  0x21   :  { %v57_v49 = vld [vmem:[%s3901_s0 + $0xc8] sm:$0xff]  ;;  %v58_v50 = vld [vmem:[%s3901_s0 + $0xd0] sm:$0xff]  ;;  %v59_v51 = vld [vmem:[%s3901_s0 + $0xd8] sm:$0xff] }
  0x22   :  { %2277 = vmatmul.mubr.msk.f32.gmra.mrb[4].mxu0 %vm73_vm0, %v37_v10  ;;  %2733 = vmatpush3.bf16.msra.mxu1 %v2730_v19  ;;  %v60_v52 = vld [vmem:[%s3901_s0 + $0xe0] sm:$0xff]  ;;  %v61_v53 = vld [vmem:[%s3901_s0 + $0xe8] sm:$0xff]  ;;  %v62_v54 = vld [vmem:[%s3901_s0 + $0xf0] sm:$0xff] }
  0x23   :  { %2279 = vmatprep.mubr.msk.f32.mxu0 %vm73_vm0, %v38_v14  ;;  %2735 = vmatprep.subr.bf16.mxu1 %v2734_v24  ;;  %v63_v55 = vld [vmem:[%s3901_s0 + $0xf8] sm:$0xff]  ;;  %v409_v56 = vld [vmem:[#allocation2 + $0x70] sm:$0xff]  ;;  %v709_v59 = vld [vmem:[#allocation2 + $0x80] sm:$0xff] }
  0x24   :  { %v410_v57 = vld [vmem:[#allocation2 + $0x78] sm:$0xff]  ;;  %v710_v60 = vld [vmem:[#allocation2 + $0x88] sm:$0xff]  ;;  %v711_v61 = vld [vmem:[#allocation2 + $0x90] sm:$0xff] }
  0x25   :  { %v2750_v58 = vpack.c.bf16 %v410_v57, %v409_v56  ;;  %v2754_v62 = vpack.c.bf16 %v710_v60, %v709_v59  ;;  %v712_v63 = vld [vmem:[#allocation2 + $0x98] sm:$0xff]  ;;  %v713_v1 = vld [vmem:[#allocation2 + $0xa0] sm:$0xff]  ;;  %v714_v2 = vld [vmem:[#allocation2 + $0xa8] sm:$0xff] }
  0x26   :  { %2280 = vmatmul.mubr.msk.f32.gmra.mrb[6].mxu0 %vm73_vm0, %v39_v18  ;;  %2737 = vmatpush3.bf16.msra.mxu1 %v2734_v24  ;;  %v2758_v0 = vpack.c.bf16 %v712_v63, %v711_v61  ;;  %v2762_v3 = vpack.c.bf16 %v714_v2, %v713_v1  ;;  %v715_v4 = vld [vmem:[#allocation2 + $0xb0] sm:$0xff]  ;;  %v716_v5 = vld [vmem:[#allocation2 + $0xb8] sm:$0xff]  ;;  %v717_v7 = vld [vmem:[#allocation2 + $0xc0] sm:$0xff] }
  0x27   :  { %2282 = vmatprep.mubr.msk.f32.mxu0 %vm73_vm0, %v40_v20  ;;  %2739 = vmatprep.subr.bf16.mxu1 %v2738_v29  ;;  %v2766_v6 = vpack.c.bf16 %v716_v5, %v715_v4  ;;  %v718_v8 = vld [vmem:[#allocation2 + $0xc8] sm:$0xff]  ;;  %v719_v10 = vld [vmem:[#allocation2 + $0xd0] sm:$0xff]  ;;  %v720_v11 = vld [vmem:[#allocation2 + $0xd8] sm:$0xff] }
  0x28   :  { %2755 = vmatprep.subr.bf16.mxu0 %v2754_v62  ;;  %v2770_v9 = vpack.c.bf16 %v718_v8, %v717_v7  ;;  %v2774_v12 = vpack.c.bf16 %v720_v11, %v719_v10  ;;  %v721_v13 = vld [vmem:[#allocation2 + $0xe0] sm:$0xff]  ;;  %v722_v14 = vld [vmem:[#allocation2 + $0xe8] sm:$0xff] }
  0x29   :  { %2757 = vmatpush3.bf16.msra.mxu0 %v2754_v62  ;;  %v2778_v15 = vpack.c.bf16 %v722_v14, %v721_v13  ;;  %v3131_v16 = vld [vmem:[%s3904_s3] ss:$0 sm:$0xff] }
  0x2a   :  { %2283 = vmatmul.mubr.msk.f32.gmra.mrb[8].mxu0 %vm73_vm0, %v41_v23  ;;  %2741 = vmatpush3.bf16.msra.mxu1 %v2738_v29 }
  0x2b   :  { %2285 = vmatprep.mubr.msk.f32.mxu0 %vm73_vm0, %v42_v25  ;;  %2743 = vmatprep.subr.bf16.mxu1 %v2742_v34 }
  0x2c   :  { %2759 = vmatprep.subr.bf16.mxu0 %v2758_v0 }
  0x2d   :  { %2761 = vmatpush3.bf16.msra.mxu0 %v2758_v0 }
  0x2e   :  { %2286 = vmatmul.mubr.msk.f32.gmra.mrb[10].mxu0 %vm73_vm0, %v43_v28  ;;  %2745 = vmatpush3.bf16.msra.mxu1 %v2742_v34 }
  0x2f   :  { %2288 = vmatprep.mubr.msk.f32.mxu0 %vm73_vm0, %v44_v30  ;;  %2747 = vmatprep.subr.bf16.mxu1 %v2746_v39 }
  0x30   :  { %2763 = vmatprep.subr.bf16.mxu0 %v2762_v3 }
  0x31   :  { %2765 = vmatpush3.bf16.msra.mxu0 %v2762_v3 }
  0x32   :  { %2289 = vmatmul.mubr.msk.f32.gmra.mrb[12].mxu0 %vm73_vm0, %v45_v33  ;;  %2749 = vmatpush3.bf16.msra.mxu1 %v2746_v39 }
  0x33   :  { %2291 = vmatprep.mubr.msk.f32.mxu0 %vm73_vm0, %v46_v35  ;;  %2751 = vmatprep.subr.bf16.mxu1 %v2750_v58 }
  0x34   :  { %2767 = vmatprep.subr.bf16.mxu0 %v2766_v6 }
  0x35   :  { %2769 = vmatpush3.bf16.msra.mxu0 %v2766_v6 }
  0x36   :  { %2292 = vmatmul.mubr.msk.f32.gmra.mrb[14].mxu0 %vm73_vm0, %v47_v38  ;;  %2753 = vmatpush3.bf16.msra.mxu1 %v2750_v58 }
  0x37   :  { %2294 = vmatprep.mubr.msk.f32.mxu0 %vm73_vm0, %v48_v40  ;;  %2771 = vmatprep.subr.bf16.mxu0 %v2770_v9 }
  0x39   :  { %2773 = vmatpush3.bf16.msra.mxu0 %v2770_v9 }
  0x3a   :  { %2295 = vmatmul.mubr.msk.f32.gmra.mrb[16].mxu0 %vm73_vm0, %v49_v41  ;;  %2775 = vmatprep.subr.bf16.mxu0 %v2774_v12 }
  0x3b   :  { %2297 = vmatprep.mubr.msk.f32.mxu0 %vm73_vm0, %v50_v42 }
  0x3d   :  { %2777 = vmatpush3.bf16.msra.mxu0 %v2774_v12 }
  0x3e   :  { %2298 = vmatmul.mubr.msk.f32.gmra.mrb[18].mxu0 %vm73_vm0, %v51_v43  ;;  %2779 = vmatprep.subr.bf16.mxu0 %v2778_v15 }
  0x3f   :  { %2300 = vmatprep.mubr.msk.f32.mxu0 %vm73_vm0, %v52_v44 }
  0x41   :  { %2781 = vmatpush3.bf16.msra.mxu0 %v2778_v15 }
  0x42   :  { %2301 = vmatmul.mubr.msk.f32.gmra.mrb[20].mxu0 %vm73_vm0, %v53_v45 }
  0x43   :  { %2303 = vmatprep.mubr.msk.f32.mxu0 %vm73_vm0, %v54_v46 }
  0x46   :  { %2304 = vmatmul.mubr.msk.f32.gmra.mrb[22].mxu0 %vm73_vm0, %v55_v47 }
  0x47   :  { %2306 = vmatprep.mubr.msk.f32.mxu0 %vm73_vm0, %v56_v48 }
  0x4a   :  { %2307 = vmatmul.mubr.msk.f32.gmra.mrb[24].mxu0 %vm73_vm0, %v57_v49 }
  0x4b   :  { %2309 = vmatprep.mubr.msk.f32.mxu0 %vm73_vm0, %v58_v50 }
  0x4e   :  { %2310 = vmatmul.mubr.msk.f32.gmra.mrb[26].mxu0 %vm73_vm0, %v59_v51 }
  0x4f   :  { %2312 = vmatprep.mubr.msk.f32.mxu0 %vm73_vm0, %v60_v52 }
  0x52   :  { %2313 = vmatmul.mubr.msk.f32.gmra.mrb[28].mxu0 %vm73_vm0, %v61_v53 }
  0x53   :  { %2315 = vmatprep.mubr.msk.f32.mxu0 %vm73_vm0, %v62_v54 }
  0x56   :  { %2316 = vmatmul.mubr.msk.f32.gmra.mrb[30].mxu0 %vm73_vm0, %v63_v55 }
  0xed   :  { %v2272_v17 = vpop.f32.mrb[0].mxu0 }
  0xee   :  { %v236_v18 = vpop.f32.mrb[1].mxu0  ;;  %v3137_v20 = vadd.f32 %v2272_v17, %v3131_v16 }
  0xef   :  { %v3134_v19 = vadd.f32 %v3131_v16, %v236_v18  ;;  %v723_v18 = vld [vmem:[#allocation2 + $0xf0] sm:$0xff] }
  0xf1   :  { %v2275_v21 = vpop.f32.mrb[2].mxu0  ;;  %2350 = vmatprep.mubr.f32.mxu1 %v3134_v19 }
  0xf2   :  { %v246_v22 = vpop.f32.mrb[3].mxu0  ;;  %2351 = vmatmul.mubr.f32.vlgmr.msra.gmra.mrb[0].mxu1 %v3137_v20  ;;  %v3145_v24 = vadd.f32 %v2275_v21, %v3131_v16  ;;  %v724_v21 = vld [vmem:[#allocation2 + $0xf8] sm:$0xff] }
  0xf3   :  { %v3142_v23 = vadd.f32 %v3131_v16, %v246_v22  ;;  %v2782_v22 = vpack.c.bf16 %v724_v21, %v723_v18 }
  0xf5   :  { %v2278_v25 = vpop.f32.mrb[4].mxu0  ;;  %2353 = vmatprep.mubr.f32.mxu1 %v3142_v23  ;;  %2783 = vmatprep.subr.bf16.mxu0 %v2782_v22 }
  0xf6   :  { %v256_v26 = vpop.f32.mrb[5].mxu0  ;;  %2354 = vmatmul.mubr.f32.gmra.mrb[2].mxu1 %v3145_v24  ;;  %v3153_v28 = vadd.f32 %v2278_v25, %v3131_v16  ;;  %2785 = vmatpush3.bf16.msra.mxu0 %v2782_v22  ;;  %v1023_v25 = vld [vmem:[#allocation2 + $0x100] sm:$0xff] }
  0xf7   :  { %v3150_v27 = vadd.f32 %v3131_v16, %v256_v26  ;;  %v1024_v26 = vld [vmem:[#allocation2 + $0x108] sm:$0xff] }
  0xf9   :  { %v2281_v29 = vpop.f32.mrb[6].mxu0  ;;  %2356 = vmatprep.mubr.f32.mxu1 %v3150_v27 }
  0xfa   :  { %v266_v30 = vpop.f32.mrb[7].mxu0  ;;  %2357 = vmatmul.mubr.f32.gmra.mrb[4].mxu1 %v3153_v28  ;;  %v3161_v32 = vadd.f32 %v2281_v29, %v3131_v16  ;;  %v1025_v29 = vld [vmem:[#allocation2 + $0x110] sm:$0xff] }
  0xfb   :  { %v3158_v31 = vadd.f32 %v3131_v16, %v266_v30  ;;  %v2786_v30 = vpack.c.bf16 %v1024_v26, %v1023_v25 }
  0xfd   :  { %v2284_v33 = vpop.f32.mrb[8].mxu0  ;;  %2359 = vmatprep.mubr.f32.mxu1 %v3158_v31  ;;  %2787 = vmatprep.subr.bf16.mxu1 %v2786_v30 }
  0xfe   :  { %v276_v34 = vpop.f32.mrb[9].mxu0  ;;  %2360 = vmatmul.mubr.f32.gmra.mrb[6].mxu1 %v3161_v32  ;;  %v3169_v36 = vadd.f32 %v2284_v33, %v3131_v16  ;;  %v1026_v33 = vld [vmem:[#allocation2 + $0x118] sm:$0xff] }
  0xff   :  { %v3166_v35 = vadd.f32 %v3131_v16, %v276_v34  ;;  %v2790_v34 = vpack.c.bf16 %v1026_v33, %v1025_v29  ;;  %2789 = vmatpush3.bf16.msra.mxu1 %v2786_v30 }
 0x101   :  { %v2287_v37 = vpop.f32.mrb[10].mxu0  ;;  %2362 = vmatprep.mubr.f32.mxu1 %v3166_v35  ;;  %2791 = vmatprep.subr.bf16.mxu1 %v2790_v34 }
 0x102   :  { %v286_v38 = vpop.f32.mrb[11].mxu0  ;;  %2363 = vmatmul.mubr.f32.gmra.mrb[8].mxu1 %v3169_v36  ;;  %v3177_v40 = vadd.f32 %v2287_v37, %v3131_v16  ;;  %v1027_v37 = vld [vmem:[#allocation2 + $0x120] sm:$0xff] }
 0x103   :  { %v3174_v39 = vadd.f32 %v3131_v16, %v286_v38  ;;  %v1028_v38 = vld [vmem:[#allocation2 + $0x128] sm:$0xff]  ;;  %2793 = vmatpush3.bf16.msra.mxu1 %v2790_v34 }
 0x105   :  { %v2290_v41 = vpop.f32.mrb[12].mxu0  ;;  %2365 = vmatprep.mubr.f32.mxu1 %v3174_v39 }
 0x106   :  { %v296_v42 = vpop.f32.mrb[13].mxu0  ;;  %2366 = vmatmul.mubr.f32.gmra.mrb[10].mxu1 %v3177_v40  ;;  %v3185_v44 = vadd.f32 %v2290_v41, %v3131_v16  ;;  %v1029_v41 = vld [vmem:[#allocation2 + $0x130] sm:$0xff] }
 0x107   :  { %v3182_v43 = vadd.f32 %v3131_v16, %v296_v42  ;;  %v1030_v42 = vld [vmem:[#allocation2 + $0x138] sm:$0xff] }
 0x109   :  { %v2293_v45 = vpop.f32.mrb[14].mxu0  ;;  %2368 = vmatprep.mubr.f32.mxu1 %v3182_v43 }
 0x10a   :  { %v306_v46 = vpop.f32.mrb[15].mxu0  ;;  %2369 = vmatmul.mubr.f32.gmra.mrb[12].mxu1 %v3185_v44  ;;  %v3193_v48 = vadd.f32 %v2293_v45, %v3131_v16  ;;  %v2798_v45 = vpack.c.bf16 %v1030_v42, %v1029_v41 }
 0x10b   :  { %v3190_v47 = vadd.f32 %v3131_v16, %v306_v46  ;;  %v1031_v46 = vld [vmem:[#allocation2 + $0x140] sm:$0xff] }
 0x10d   :  { %v2296_v49 = vpop.f32.mrb[16].mxu0  ;;  %2371 = vmatprep.mubr.f32.mxu1 %v3190_v47 }
 0x10e   :  { %v316_v50 = vpop.f32.mrb[17].mxu0  ;;  %2372 = vmatmul.mubr.f32.gmra.mrb[14].mxu1 %v3193_v48  ;;  %v3201_v52 = vadd.f32 %v2296_v49, %v3131_v16  ;;  %v1032_v49 = vld [vmem:[#allocation2 + $0x148] sm:$0xff] }
 0x10f   :  { %v3198_v51 = vadd.f32 %v3131_v16, %v316_v50  ;;  %v2802_v50 = vpack.c.bf16 %v1032_v49, %v1031_v46 }
 0x111   :  { %v2299_v53 = vpop.f32.mrb[18].mxu0  ;;  %2374 = vmatprep.mubr.f32.mxu1 %v3198_v51 }
 0x112   :  { %v326_v54 = vpop.f32.mrb[19].mxu0  ;;  %2375 = vmatmul.mubr.f32.gmra.mrb[16].mxu1 %v3201_v52  ;;  %v3209_v56 = vadd.f32 %v2299_v53, %v3131_v16  ;;  %v1033_v53 = vld [vmem:[#allocation2 + $0x150] sm:$0xff] }
 0x113   :  { %v3206_v55 = vadd.f32 %v3131_v16, %v326_v54  ;;  %v1034_v54 = vld [vmem:[#allocation2 + $0x158] sm:$0xff] }
 0x115   :  { %v2302_v57 = vpop.f32.mrb[20].mxu0  ;;  %2377 = vmatprep.mubr.f32.mxu1 %v3206_v55 }
 0x116   :  { %v336_v58 = vpop.f32.mrb[21].mxu0  ;;  %2378 = vmatmul.mubr.f32.gmra.mrb[18].mxu1 %v3209_v56  ;;  %v3217_v60 = vadd.f32 %v2302_v57, %v3131_v16  ;;  %v2806_v57 = vpack.c.bf16 %v1034_v54, %v1033_v53 }
 0x117   :  { %v3214_v59 = vadd.f32 %v3131_v16, %v336_v58  ;;  %v1035_v58 = vld [vmem:[#allocation2 + $0x160] sm:$0xff] }
 0x119   :  { %v2305_v61 = vpop.f32.mrb[22].mxu0  ;;  %2380 = vmatprep.mubr.f32.mxu1 %v3214_v59 }
 0x11a   :  { %v346_v62 = vpop.f32.mrb[23].mxu0  ;;  %2381 = vmatmul.mubr.f32.gmra.mrb[20].mxu1 %v3217_v60  ;;  %v3225_v0 = vadd.f32 %v2305_v61, %v3131_v16  ;;  %v1036_v61 = vld [vmem:[#allocation2 + $0x168] sm:$0xff] }
 0x11b   :  { %v3222_v63 = vadd.f32 %v3131_v16, %v346_v62  ;;  %v2810_v62 = vpack.c.bf16 %v1036_v61, %v1035_v58 }
 0x11d   :  { %v2308_v1 = vpop.f32.mrb[24].mxu0  ;;  %2383 = vmatprep.mubr.f32.mxu1 %v3222_v63 }
 0x11e   :  { %v356_v2 = vpop.f32.mrb[25].mxu0  ;;  %2384 = vmatmul.mubr.f32.gmra.mrb[22].mxu1 %v3225_v0  ;;  %v3233_v4 = vadd.f32 %v2308_v1, %v3131_v16  ;;  %v3264_v1 = vld [vmem:[%s3904_s3 + $0x1] ss:$0 sm:$0xff] }
 0x11f   :  { %v3230_v3 = vadd.f32 %v3131_v16, %v356_v2 }
 0x121   :  { %v2311_v5 = vpop.f32.mrb[26].mxu0  ;;  %2386 = vmatprep.mubr.f32.mxu1 %v3230_v3 }
 0x122   :  { %v366_v6 = vpop.f32.mrb[27].mxu0  ;;  %2387 = vmatmul.mubr.f32.gmra.mrb[24].mxu1 %v3233_v4  ;;  %v3241_v8 = vadd.f32 %v2311_v5, %v3131_v16 }
 0x123   :  { %v3238_v7 = vadd.f32 %v3131_v16, %v366_v6 }
 0x125   :  { %v2314_v9 = vpop.f32.mrb[28].mxu0  ;;  %2389 = vmatprep.mubr.f32.mxu1 %v3238_v7 }
 0x126   :  { %v376_v10 = vpop.f32.mrb[29].mxu0  ;;  %2390 = vmatmul.mubr.f32.gmra.mrb[26].mxu1 %v3241_v8  ;;  %v3249_v12 = vadd.f32 %v2314_v9, %v3131_v16 }
 0x127   :  { %v3246_v11 = vadd.f32 %v3131_v16, %v376_v10 }
 0x129   :  { %v2317_v13 = vpop.f32.mrb[30].mxu0  ;;  %2392 = vmatprep.mubr.f32.mxu1 %v3246_v11 }
 0x12a   :  { %v386_v14 = vpop.f32.mrb[31].mxu0  ;;  %2393 = vmatmul.mubr.f32.gmra.mrb[28].mxu1 %v3249_v12  ;;  %v3257_v17 = vadd.f32 %v2317_v13, %v3131_v16 }
 0x12b   :  { %v3254_v15 = vadd.f32 %v3131_v16, %v386_v14  ;;  %v2794_v16 = vpack.c.bf16 %v1028_v38, %v1027_v37 }
 0x12d   :  { %2395 = vmatprep.mubr.f32.mxu1 %v3254_v15  ;;  %2795 = vmatprep.subr.bf16.mxu1 %v2794_v16 }
 0x12e   :  { %2396 = vmatmul.mubr.f32.gmra.mrb[30].mxu1 %v3257_v17 }
 0x12f   :  { %2797 = vmatpush3.bf16.msra.mxu1 %v2794_v16 }
 0x130   :  { %2799 = vmatprep.subr.bf16.mxu1 %v2798_v45 }
 0x133   :  { %2801 = vmatpush3.bf16.msra.mxu1 %v2798_v45 }
 0x134   :  { %2803 = vmatprep.subr.bf16.mxu1 %v2802_v50 }
 0x137   :  { %2805 = vmatpush3.bf16.msra.mxu1 %v2802_v50 }
 0x138   :  { %2807 = vmatprep.subr.bf16.mxu1 %v2806_v57 }
 0x13b   :  { %2809 = vmatpush3.bf16.msra.mxu1 %v2806_v57 }
 0x13c   :  { %2811 = vmatprep.subr.bf16.mxu1 %v2810_v62 }
 0x13f   :  { %2813 = vmatpush3.bf16.msra.mxu1 %v2810_v62 }
 0x1c5   :  { %v2352_v2 = vpop.f32.mrb[0].mxu1 }
 0x1c6   :  { %v491_v5 = vadd.f32 %v2352_v2, %v3264_v1  ;;  %v485_v6 = vpop.f32.mrb[1].mxu1 }
 0x1c7   :  { %v486_v9 = vadd.f32 %v3264_v1, %v485_v6 }
 0x1c8   :  { %v645_v10 = vmax.f32 %v491_v5, 0.0 }
 0x1c9   :  { %v644_v13 = vmax.f32 %v486_v9, 0.0  ;;  %v2355_v14 = vpop.f32.mrb[2].mxu1 }
 0x1ca   :  { %v501_v18 = vadd.f32 %v2355_v14, %v3264_v1  ;;  %v495_v21 = vpop.f32.mrb[3].mxu1  ;;  %v3274_v26 = vadd.f32 %v645_v10, %v3137_v20 }
 0x1cb   :  { %v3270_v22 = vadd.f32 %v644_v13, %v3134_v19  ;;  %v496_v25 = vadd.f32 %v3264_v1, %v495_v21 }
 0x1cc   :  { %v647_v29 = vmax.f32 %v501_v18, 0.0 }
 0x1cd   :  { %v646_v30 = vmax.f32 %v496_v25, 0.0  ;;  %v2358_v33 = vpop.f32.mrb[4].mxu1  ;;  %2430 = vmatprep.mubr.f32.mxu0 %v3270_v22 }
 0x1ce   :  { %v511_v34 = vadd.f32 %v2358_v33, %v3264_v1  ;;  %v505_v37 = vpop.f32.mrb[5].mxu1  ;;  %2431 = vmatmul.mubr.f32.vlgmr.msra.gmra.mrb[32].mxu0 %v3274_v26  ;;  %v3284_v16 = vadd.f32 %v647_v29, %v3145_v24 }
 0x1cf   :  { %v3280_v38 = vadd.f32 %v646_v30, %v3142_v23  ;;  %v506_v19 = vadd.f32 %v3264_v1, %v505_v37 }
 0x1d0   :  { %v649_v20 = vmax.f32 %v511_v34, 0.0 }
 0x1d1   :  { %v648_v41 = vmax.f32 %v506_v19, 0.0  ;;  %v2361_v42 = vpop.f32.mrb[6].mxu1  ;;  %2433 = vmatprep.mubr.f32.mxu0 %v3280_v38 }
 0x1d2   :  { %v521_v45 = vadd.f32 %v2361_v42, %v3264_v1  ;;  %v515_v46 = vpop.f32.mrb[7].mxu1  ;;  %2434 = vmatmul.mubr.f32.gmra.mrb[34].mxu0 %v3284_v16  ;;  %v3294_v50 = vadd.f32 %v649_v20, %v3153_v28 }
 0x1d3   :  { %v3290_v49 = vadd.f32 %v648_v41, %v3150_v27  ;;  %v516_v23 = vadd.f32 %v3264_v1, %v515_v46 }
 0x1d4   :  { %v651_v24 = vmax.f32 %v521_v45, 0.0 }
 0x1d5   :  { %v650_v53 = vmax.f32 %v516_v23, 0.0  ;;  %v2364_v54 = vpop.f32.mrb[8].mxu1  ;;  %2436 = vmatprep.mubr.f32.mxu0 %v3290_v49 }
 0x1d6   :  { %v531_v57 = vadd.f32 %v2364_v54, %v3264_v1  ;;  %v525_v58 = vpop.f32.mrb[9].mxu1  ;;  %2437 = vmatmul.mubr.f32.gmra.mrb[36].mxu0 %v3294_v50  ;;  %v3304_v62 = vadd.f32 %v651_v24, %v3161_v32 }
 0x1d7   :  { %v3300_v61 = vadd.f32 %v650_v53, %v3158_v31  ;;  %v526_v27 = vadd.f32 %v3264_v1, %v525_v58 }
 0x1d8   :  { %v653_v28 = vmax.f32 %v531_v57, 0.0 }
 0x1d9   :  { %v652_v2 = vmax.f32 %v526_v27, 0.0  ;;  %v2367_v5 = vpop.f32.mrb[10].mxu1  ;;  %2439 = vmatprep.mubr.f32.mxu0 %v3300_v61 }
 0x1da   :  { %v541_v6 = vadd.f32 %v2367_v5, %v3264_v1  ;;  %v535_v9 = vpop.f32.mrb[11].mxu1  ;;  %2440 = vmatmul.mubr.f32.gmra.mrb[38].mxu0 %v3304_v62  ;;  %v3314_v13 = vadd.f32 %v653_v28, %v3169_v36 }
 0x1db   :  { %v3310_v10 = vadd.f32 %v652_v2, %v3166_v35  ;;  %v536_v31 = vadd.f32 %v3264_v1, %v535_v9 }
 0x1dc   :  { %v655_v32 = vmax.f32 %v541_v6, 0.0 }
 0x1dd   :  { %v654_v14 = vmax.f32 %v536_v31, 0.0  ;;  %v2370_v18 = vpop.f32.mrb[12].mxu1  ;;  %2442 = vmatprep.mubr.f32.mxu0 %v3310_v10 }
 0x1de   :  { %v551_v21 = vadd.f32 %v2370_v18, %v3264_v1  ;;  %v545_v25 = vpop.f32.mrb[13].mxu1  ;;  %2443 = vmatmul.mubr.f32.gmra.mrb[40].mxu0 %v3314_v13  ;;  %v3324_v30 = vadd.f32 %v655_v32, %v3177_v40 }
 0x1df   :  { %v3320_v29 = vadd.f32 %v654_v14, %v3174_v39  ;;  %v546_v35 = vadd.f32 %v3264_v1, %v545_v25 }
 0x1e0   :  { %v657_v36 = vmax.f32 %v551_v21, 0.0 }
 0x1e1   :  { %v656_v33 = vmax.f32 %v546_v35, 0.0  ;;  %v2373_v34 = vpop.f32.mrb[14].mxu1  ;;  %2445 = vmatprep.mubr.f32.mxu0 %v3320_v29 }
 0x1e2   :  { %v561_v37 = vadd.f32 %v2373_v34, %v3264_v1  ;;  %v555_v19 = vpop.f32.mrb[15].mxu1  ;;  %2446 = vmatmul.mubr.f32.gmra.mrb[42].mxu0 %v3324_v30  ;;  %v3334_v41 = vadd.f32 %v657_v36, %v3185_v44 }
 0x1e3   :  { %v3330_v20 = vadd.f32 %v656_v33, %v3182_v43  ;;  %v556_v39 = vadd.f32 %v3264_v1, %v555_v19 }
 0x1e4   :  { %v659_v40 = vmax.f32 %v561_v37, 0.0 }
 0x1e5   :  { %v658_v42 = vmax.f32 %v556_v39, 0.0  ;;  %v2376_v45 = vpop.f32.mrb[16].mxu1  ;;  %2448 = vmatprep.mubr.f32.mxu0 %v3330_v20 }
 0x1e6   :  { %v571_v46 = vadd.f32 %v2376_v45, %v3264_v1  ;;  %v565_v23 = vpop.f32.mrb[17].mxu1  ;;  %2449 = vmatmul.mubr.f32.gmra.mrb[44].mxu0 %v3334_v41  ;;  %v3344_v53 = vadd.f32 %v659_v40, %v3193_v48 }
 0x1e7   :  { %v3340_v24 = vadd.f32 %v658_v42, %v3190_v47  ;;  %v566_v43 = vadd.f32 %v3264_v1, %v565_v23 }
 0x1e8   :  { %v661_v44 = vmax.f32 %v571_v46, 0.0 }
 0x1e9   :  { %v660_v54 = vmax.f32 %v566_v43, 0.0  ;;  %v2379_v57 = vpop.f32.mrb[18].mxu1  ;;  %2451 = vmatprep.mubr.f32.mxu0 %v3340_v24 }
 0x1ea   :  { %v581_v58 = vadd.f32 %v2379_v57, %v3264_v1  ;;  %v575_v27 = vpop.f32.mrb[19].mxu1  ;;  %2452 = vmatmul.mubr.f32.gmra.mrb[46].mxu0 %v3344_v53  ;;  %v3354_v2 = vadd.f32 %v661_v44, %v3201_v52 }
 0x1eb   :  { %v3350_v28 = vadd.f32 %v660_v54, %v3198_v51  ;;  %v576_v47 = vadd.f32 %v3264_v1, %v575_v27 }
 0x1ec   :  { %v663_v48 = vmax.f32 %v581_v58, 0.0 }
 0x1ed   :  { %v662_v5 = vmax.f32 %v576_v47, 0.0  ;;  %v2382_v6 = vpop.f32.mrb[20].mxu1  ;;  %2454 = vmatprep.mubr.f32.mxu0 %v3350_v28 }
 0x1ee   :  { %v591_v9 = vadd.f32 %v2382_v6, %v3264_v1  ;;  %v585_v31 = vpop.f32.mrb[21].mxu1  ;;  %2455 = vmatmul.mubr.f32.gmra.mrb[48].mxu0 %v3354_v2  ;;  %v3364_v14 = vadd.f32 %v663_v48, %v3209_v56 }
 0x1ef   :  { %v3360_v32 = vadd.f32 %v662_v5, %v3206_v55  ;;  %v586_v51 = vadd.f32 %v3264_v1, %v585_v31 }
 0x1f0   :  { %v665_v52 = vmax.f32 %v591_v9, 0.0 }
 0x1f1   :  { %v664_v18 = vmax.f32 %v586_v51, 0.0  ;;  %v2385_v21 = vpop.f32.mrb[22].mxu1  ;;  %2457 = vmatprep.mubr.f32.mxu0 %v3360_v32 }
 0x1f2   :  { %v601_v25 = vadd.f32 %v2385_v21, %v3264_v1  ;;  %v595_v35 = vpop.f32.mrb[23].mxu1  ;;  %2458 = vmatmul.mubr.f32.gmra.mrb[50].mxu0 %v3364_v14  ;;  %v3374_v33 = vadd.f32 %v665_v52, %v3217_v60 }
 0x1f3   :  { %v3370_v36 = vadd.f32 %v664_v18, %v3214_v59  ;;  %v596_v55 = vadd.f32 %v3264_v1, %v595_v35 }
 0x1f4   :  { %v667_v56 = vmax.f32 %v601_v25, 0.0 }
 0x1f5   :  { %v666_v34 = vmax.f32 %v596_v55, 0.0  ;;  %v2388_v37 = vpop.f32.mrb[24].mxu1  ;;  %2460 = vmatprep.mubr.f32.mxu0 %v3370_v36  ;;  %v1337_v55 = vld [vmem:[#allocation2 + $0x180] sm:$0xff] }
 0x1f6   :  { %v611_v19 = vadd.f32 %v2388_v37, %v3264_v1  ;;  %v605_v39 = vpop.f32.mrb[25].mxu1  ;;  %2461 = vmatmul.mubr.f32.gmra.mrb[52].mxu0 %v3374_v33  ;;  %v3384_v42 = vadd.f32 %v667_v56, %v3225_v0  ;;  %v1338_v56 = vld [vmem:[#allocation2 + $0x188] sm:$0xff] }
 0x1f7   :  { %v3380_v40 = vadd.f32 %v666_v34, %v3222_v63  ;;  %v606_v59 = vadd.f32 %v3264_v1, %v605_v39  ;;  %v1339_v34 = vld [vmem:[#allocation2 + $0x190] sm:$0xff]  ;;  %v2818_v37 = vpack.c.bf16 %v1338_v56, %v1337_v55 }
 0x1f8   :  { %v669_v60 = vmax.f32 %v611_v19, 0.0  ;;  %v1340_v19 = vld [vmem:[#allocation2 + $0x198] sm:$0xff] }
 0x1f9   :  { %v668_v45 = vmax.f32 %v606_v59, 0.0  ;;  %v2391_v46 = vpop.f32.mrb[26].mxu1  ;;  %2463 = vmatprep.mubr.f32.mxu0 %v3380_v40  ;;  %v2822_v39 = vpack.c.bf16 %v1340_v19, %v1339_v34  ;;  %v1342_v59 = vld [vmem:[#allocation2 + $0x1a8] sm:$0xff]  ;;  %2819 = vmatprep.subr.bf16.mxu0 %v2818_v37 }
 0x1fa   :  { %v621_v23 = vadd.f32 %v2391_v46, %v3264_v1  ;;  %v615_v43 = vpop.f32.mrb[27].mxu1  ;;  %2464 = vmatmul.mubr.f32.gmra.mrb[54].mxu0 %v3384_v42  ;;  %v3394_v54 = vadd.f32 %v669_v60, %v3233_v4  ;;  %v1343_v60 = vld [vmem:[#allocation2 + $0x1b0] sm:$0xff] }
 0x1fb   :  { %v3390_v44 = vadd.f32 %v668_v45, %v3230_v3  ;;  %v616_v63 = vadd.f32 %v3264_v1, %v615_v43  ;;  %2821 = vmatpush3.bf16.msra.mxu0 %v2818_v37  ;;  %v1344_v45 = vld [vmem:[#allocation2 + $0x1b8] sm:$0xff]  ;;  %v1346_v43 = vld [vmem:[#allocation2 + $0x1c8] sm:$0xff] }
 0x1fc   :  { %v671_v0 = vmax.f32 %v621_v23, 0.0  ;;  %2823 = vmatprep.subr.bf16.mxu0 %v2822_v39  ;;  %v2830_v46 = vpack.c.bf16 %v1344_v45, %v1343_v60  ;;  %v1345_v23 = vld [vmem:[#allocation2 + $0x1c0] sm:$0xff] }
 0x1fd   :  { %v670_v57 = vmax.f32 %v616_v63, 0.0  ;;  %v2394_v58 = vpop.f32.mrb[28].mxu1  ;;  %2466 = vmatprep.mubr.f32.mxu0 %v3390_v44  ;;  %v2834_v63 = vpack.c.bf16 %v1346_v43, %v1345_v23 }
 0x1fe   :  { %v631_v27 = vadd.f32 %v2394_v58, %v3264_v1  ;;  %v625_v47 = vpop.f32.mrb[29].mxu1  ;;  %2467 = vmatmul.mubr.f32.gmra.mrb[56].mxu0 %v3394_v54  ;;  %v3404_v5 = vadd.f32 %v671_v0, %v3241_v8  ;;  %v1347_v0 = vld [vmem:[#allocation2 + $0x1d0] sm:$0xff] }
 0x1ff   :  { %v3400_v48 = vadd.f32 %v670_v57, %v3238_v7  ;;  %v626_v3 = vadd.f32 %v3264_v1, %v625_v47  ;;  %2825 = vmatpush3.bf16.msra.mxu0 %v2822_v39  ;;  %v1348_v57 = vld [vmem:[#allocation2 + $0x1d8] sm:$0xff]  ;;  %v1350_v47 = vld [vmem:[#allocation2 + $0x1e8] sm:$0xff] }
 0x200   :  { %v673_v4 = vmax.f32 %v631_v27, 0.0  ;;  %v2838_v58 = vpack.c.bf16 %v1348_v57, %v1347_v0  ;;  %v1349_v27 = vld [vmem:[#allocation2 + $0x1e0] sm:$0xff] }
 0x201   :  { %v672_v6 = vmax.f32 %v626_v3, 0.0  ;;  %v2397_v9 = vpop.f32.mrb[30].mxu1  ;;  %2469 = vmatprep.mubr.f32.mxu0 %v3400_v48  ;;  %v2842_v3 = vpack.c.bf16 %v1350_v47, %v1349_v27 }
 0x202   :  { %v641_v31 = vadd.f32 %v2397_v9, %v3264_v1  ;;  %v635_v51 = vpop.f32.mrb[31].mxu1  ;;  %2470 = vmatmul.mubr.f32.gmra.mrb[58].mxu0 %v3404_v5  ;;  %v3414_v18 = vadd.f32 %v673_v4, %v3249_v12  ;;  %v3429_v4 = vld [vmem:[%s3904_s3 + $0x2] ss:$0 sm:$0xff] }
 0x203   :  { %v3410_v52 = vadd.f32 %v672_v6, %v3246_v11  ;;  %v636_v7 = vadd.f32 %v3264_v1, %v635_v51  ;;  %v1037_v11 = vld [vmem:[#allocation2 + $0x170] sm:$0xff]  ;;  %v1038_v1 = vld [vmem:[#allocation2 + $0x178] sm:$0xff] }
 0x204   :  { %v675_v8 = vmax.f32 %v641_v31, 0.0  ;;  %v2814_v12 = vpack.c.bf16 %v1038_v1, %v1037_v11 }
 0x205   :  { %v674_v21 = vmax.f32 %v636_v7, 0.0  ;;  %2472 = vmatprep.mubr.f32.mxu0 %v3410_v52 }
 0x206   :  { %2473 = vmatmul.mubr.f32.gmra.mrb[60].mxu0 %v3414_v18  ;;  %v3422_v35 = vadd.f32 %v675_v8, %v3257_v17  ;;  %2815 = vmatprep.subr.bf16.mxu1 %v2814_v12 }
 0x207   :  { %v3419_v25 = vadd.f32 %v674_v21, %v3254_v15  ;;  %2817 = vmatpush3.bf16.msra.mxu1 %v2814_v12  ;;  %v1341_v15 = vld [vmem:[#allocation2 + $0x1a0] sm:$0xff] }
 0x208   :  { %v2826_v17 = vpack.c.bf16 %v1342_v59, %v1341_v15 }
 0x209   :  { %2475 = vmatprep.mubr.f32.mxu0 %v3419_v25 }
 0x20a   :  { %2476 = vmatmul.mubr.f32.gmra.mrb[62].mxu0 %v3422_v35  ;;  %2827 = vmatprep.subr.bf16.mxu0 %v2826_v17 }
 0x20b   :  { %2829 = vmatpush3.bf16.msra.mxu0 %v2826_v17 }
 0x20c   :  { %2831 = vmatprep.subr.bf16.mxu0 %v2830_v46 }
 0x20f   :  { %2833 = vmatpush3.bf16.msra.mxu0 %v2830_v46 }
 0x210   :  { %2835 = vmatprep.subr.bf16.mxu0 %v2834_v63 }
 0x213   :  { %2837 = vmatpush3.bf16.msra.mxu0 %v2834_v63 }
 0x214   :  { %2839 = vmatprep.subr.bf16.mxu0 %v2838_v58 }
 0x217   :  { %2841 = vmatpush3.bf16.msra.mxu0 %v2838_v58 }
 0x218   :  { %2843 = vmatprep.subr.bf16.mxu0 %v2842_v3 }
 0x21b   :  { %2845 = vmatpush3.bf16.msra.mxu0 %v2842_v3 }
 0x2a1   :  { %v2432_v6 = vpop.f32.mrb[32].mxu0 }
 0x2a2   :  { %v805_v9 = vadd.f32 %v2432_v6, %v3429_v4  ;;  %v799_v31 = vpop.f32.mrb[33].mxu0 }
 0x2a3   :  { %v800_v51 = vadd.f32 %v3429_v4, %v799_v31 }
 0x2a4   :  { %v959_v7 = vmax.f32 %v805_v9, 0.0 }
 0x2a5   :  { %v958_v8 = vmax.f32 %v800_v51, 0.0  ;;  %v2435_v21 = vpop.f32.mrb[34].mxu0 }
 0x2a6   :  { %v815_v11 = vadd.f32 %v2435_v21, %v3429_v4  ;;  %v809_v1 = vpop.f32.mrb[35].mxu0  ;;  %v3439_v56 = vadd.f32 %v959_v7, %v3274_v26 }
 0x2a7   :  { %v3435_v12 = vadd.f32 %v958_v8, %v3270_v22  ;;  %v810_v55 = vadd.f32 %v3429_v4, %v809_v1 }
 0x2a8   :  { %v961_v34 = vmax.f32 %v815_v11, 0.0 }
 0x2a9   :  { %v960_v37 = vmax.f32 %v810_v55, 0.0  ;;  %v2438_v19 = vpop.f32.mrb[36].mxu0  ;;  %2510 = vmatprep.mubr.f32.mxu1 %v3435_v12 }
 0x2aa   :  { %v825_v39 = vadd.f32 %v2438_v19, %v3429_v4  ;;  %v819_v15 = vpop.f32.mrb[37].mxu0  ;;  %2511 = vmatmul.mubr.f32.vlgmr.msra.gmra.mrb[32].mxu1 %v3439_v56  ;;  %v3449_v17 = vadd.f32 %v961_v34, %v3284_v16 }
 0x2ab   :  { %v3445_v59 = vadd.f32 %v960_v37, %v3280_v38  ;;  %v820_v22 = vadd.f32 %v3429_v4, %v819_v15 }
 0x2ac   :  { %v963_v26 = vmax.f32 %v825_v39, 0.0 }
 0x2ad   :  { %v962_v60 = vmax.f32 %v820_v22, 0.0  ;;  %v2441_v45 = vpop.f32.mrb[38].mxu0  ;;  %2513 = vmatprep.mubr.f32.mxu1 %v3445_v59 }
 0x2ae   :  { %v835_v46 = vadd.f32 %v2441_v45, %v3429_v4  ;;  %v829_v23 = vpop.f32.mrb[39].mxu0  ;;  %2514 = vmatmul.mubr.f32.gmra.mrb[34].mxu1 %v3449_v17  ;;  %v3459_v63 = vadd.f32 %v963_v26, %v3294_v50 }
 0x2af   :  { %v3455_v43 = vadd.f32 %v962_v60, %v3290_v49  ;;  %v830_v38 = vadd.f32 %v3429_v4, %v829_v23 }
 0x2b0   :  { %v965_v16 = vmax.f32 %v835_v46, 0.0 }
 0x2b1   :  { %v964_v0 = vmax.f32 %v830_v38, 0.0  ;;  %v2444_v57 = vpop.f32.mrb[40].mxu0  ;;  %2516 = vmatprep.mubr.f32.mxu1 %v3455_v43 }
 0x2b2   :  { %v845_v58 = vadd.f32 %v2444_v57, %v3429_v4  ;;  %v839_v27 = vpop.f32.mrb[41].mxu0  ;;  %2517 = vmatmul.mubr.f32.gmra.mrb[36].mxu1 %v3459_v63  ;;  %v3469_v3 = vadd.f32 %v965_v16, %v3304_v62 }
 0x2b3   :  { %v3465_v47 = vadd.f32 %v964_v0, %v3300_v61  ;;  %v840_v49 = vadd.f32 %v3429_v4, %v839_v27 }
 0x2b4   :  { %v967_v50 = vmax.f32 %v845_v58, 0.0 }
 0x2b5   :  { %v966_v6 = vmax.f32 %v840_v49, 0.0  ;;  %v2447_v9 = vpop.f32.mrb[42].mxu0  ;;  %2519 = vmatprep.mubr.f32.mxu1 %v3465_v47 }
 0x2b6   :  { %v855_v31 = vadd.f32 %v2447_v9, %v3429_v4  ;;  %v849_v51 = vpop.f32.mrb[43].mxu0  ;;  %2520 = vmatmul.mubr.f32.gmra.mrb[38].mxu1 %v3469_v3  ;;  %v3479_v8 = vadd.f32 %v967_v50, %v3314_v13 }
 0x2b7   :  { %v3475_v7 = vadd.f32 %v966_v6, %v3310_v10  ;;  %v850_v61 = vadd.f32 %v3429_v4, %v849_v51 }
 0x2b8   :  { %v969_v62 = vmax.f32 %v855_v31, 0.0 }
 0x2b9   :  { %v968_v21 = vmax.f32 %v850_v61, 0.0  ;;  %v2450_v11 = vpop.f32.mrb[44].mxu0  ;;  %2522 = vmatprep.mubr.f32.mxu1 %v3475_v7 }
 0x2ba   :  { %v865_v1 = vadd.f32 %v2450_v11, %v3429_v4  ;;  %v859_v55 = vpop.f32.mrb[45].mxu0  ;;  %2523 = vmatmul.mubr.f32.gmra.mrb[40].mxu1 %v3479_v8  ;;  %v3489_v37 = vadd.f32 %v969_v62, %v3324_v30 }
 0x2bb   :  { %v3485_v34 = vadd.f32 %v968_v21, %v3320_v29  ;;  %v860_v10 = vadd.f32 %v3429_v4, %v859_v55 }
 0x2bc   :  { %v971_v13 = vmax.f32 %v865_v1, 0.0 }
 0x2bd   :  { %v970_v19 = vmax.f32 %v860_v10, 0.0  ;;  %v2453_v39 = vpop.f32.mrb[46].mxu0  ;;  %2525 = vmatprep.mubr.f32.mxu1 %v3485_v34 }
 0x2be   :  { %v875_v15 = vadd.f32 %v2453_v39, %v3429_v4  ;;  %v869_v22 = vpop.f32.mrb[47].mxu0  ;;  %2526 = vmatmul.mubr.f32.gmra.mrb[42].mxu1 %v3489_v37  ;;  %v3499_v60 = vadd.f32 %v971_v13, %v3334_v41 }
 0x2bf   :  { %v3495_v26 = vadd.f32 %v970_v19, %v3330_v20  ;;  %v870_v29 = vadd.f32 %v3429_v4, %v869_v22 }
 0x2c0   :  { %v973_v30 = vmax.f32 %v875_v15, 0.0 }
 0x2c1   :  { %v972_v45 = vmax.f32 %v870_v29, 0.0  ;;  %v2456_v46 = vpop.f32.mrb[48].mxu0  ;;  %2528 = vmatprep.mubr.f32.mxu1 %v3495_v26 }
 0x2c2   :  { %v885_v23 = vadd.f32 %v2456_v46, %v3429_v4  ;;  %v879_v38 = vpop.f32.mrb[49].mxu0  ;;  %2529 = vmatmul.mubr.f32.gmra.mrb[44].mxu1 %v3499_v60  ;;  %v3509_v0 = vadd.f32 %v973_v30, %v3344_v53 }
 0x2c3   :  { %v3505_v16 = vadd.f32 %v972_v45, %v3340_v24  ;;  %v880_v20 = vadd.f32 %v3429_v4, %v879_v38 }
 0x2c4   :  { %v975_v41 = vmax.f32 %v885_v23, 0.0 }
 0x2c5   :  { %v974_v57 = vmax.f32 %v880_v20, 0.0  ;;  %v2459_v58 = vpop.f32.mrb[50].mxu0  ;;  %2531 = vmatprep.mubr.f32.mxu1 %v3505_v16 }
 0x2c6   :  { %v895_v27 = vadd.f32 %v2459_v58, %v3429_v4  ;;  %v889_v49 = vpop.f32.mrb[51].mxu0  ;;  %2532 = vmatmul.mubr.f32.gmra.mrb[46].mxu1 %v3509_v0  ;;  %v3519_v6 = vadd.f32 %v975_v41, %v3354_v2 }
 0x2c7   :  { %v3515_v50 = vadd.f32 %v974_v57, %v3350_v28  ;;  %v890_v24 = vadd.f32 %v3429_v4, %v889_v49 }
 0x2c8   :  { %v977_v53 = vmax.f32 %v895_v27, 0.0 }
 0x2c9   :  { %v976_v9 = vmax.f32 %v890_v24, 0.0  ;;  %v2462_v31 = vpop.f32.mrb[52].mxu0  ;;  %2534 = vmatprep.mubr.f32.mxu1 %v3515_v50 }
 0x2ca   :  { %v905_v51 = vadd.f32 %v2462_v31, %v3429_v4  ;;  %v899_v61 = vpop.f32.mrb[53].mxu0  ;;  %2535 = vmatmul.mubr.f32.gmra.mrb[48].mxu1 %v3519_v6  ;;  %v3529_v21 = vadd.f32 %v977_v53, %v3364_v14 }
 0x2cb   :  { %v3525_v62 = vadd.f32 %v976_v9, %v3360_v32  ;;  %v900_v28 = vadd.f32 %v3429_v4, %v899_v61 }
 0x2cc   :  { %v979_v2 = vmax.f32 %v905_v51, 0.0 }
 0x2cd   :  { %v978_v11 = vmax.f32 %v900_v28, 0.0  ;;  %v2465_v1 = vpop.f32.mrb[54].mxu0  ;;  %2537 = vmatprep.mubr.f32.mxu1 %v3525_v62 }
 0x2ce   :  { %v915_v55 = vadd.f32 %v2465_v1, %v3429_v4  ;;  %v909_v10 = vpop.f32.mrb[55].mxu0  ;;  %2538 = vmatmul.mubr.f32.gmra.mrb[50].mxu1 %v3529_v21  ;;  %v3539_v19 = vadd.f32 %v979_v2, %v3374_v33 }
 0x2cf   :  { %v3535_v13 = vadd.f32 %v978_v11, %v3370_v36  ;;  %v910_v32 = vadd.f32 %v3429_v4, %v909_v10 }
 0x2d0   :  { %v981_v14 = vmax.f32 %v915_v55, 0.0 }
 0x2d1   :  { %v980_v39 = vmax.f32 %v910_v32, 0.0  ;;  %v2468_v15 = vpop.f32.mrb[56].mxu0  ;;  %2540 = vmatprep.mubr.f32.mxu1 %v3535_v13  ;;  %v1651_v32 = vld [vmem:[#allocation2 + $0x200] sm:$0xff] }
 0x2d2   :  { %v925_v22 = vadd.f32 %v2468_v15, %v3429_v4  ;;  %v919_v29 = vpop.f32.mrb[57].mxu0  ;;  %2541 = vmatmul.mubr.f32.gmra.mrb[52].mxu1 %v3539_v19  ;;  %v3549_v45 = vadd.f32 %v981_v14, %v3384_v42  ;;  %v1652_v14 = vld [vmem:[#allocation2 + $0x208] sm:$0xff] }
 0x2d3   :  { %v3545_v30 = vadd.f32 %v980_v39, %v3380_v40  ;;  %v920_v36 = vadd.f32 %v3429_v4, %v919_v29  ;;  %v1653_v39 = vld [vmem:[#allocation2 + $0x210] sm:$0xff]  ;;  %v2850_v15 = vpack.c.bf16 %v1652_v14, %v1651_v32  ;;  %v1656_v29 = vld [vmem:[#allocation2 + $0x228] sm:$0xff] }
 0x2d4   :  { %v983_v33 = vmax.f32 %v925_v22, 0.0  ;;  %v1654_v22 = vld [vmem:[#allocation2 + $0x218] sm:$0xff] }
 0x2d5   :  { %v982_v46 = vmax.f32 %v920_v36, 0.0  ;;  %v2471_v23 = vpop.f32.mrb[58].mxu0  ;;  %2543 = vmatprep.mubr.f32.mxu1 %v3545_v30  ;;  %2882 = vmatprep.subr.bf16.mxu1 %v2850_v15 }
 0x2d6   :  { %v935_v38 = vadd.f32 %v2471_v23, %v3429_v4  ;;  %v929_v20 = vpop.f32.mrb[59].mxu0  ;;  %2544 = vmatmul.mubr.f32.gmra.mrb[54].mxu1 %v3549_v45  ;;  %v3559_v57 = vadd.f32 %v983_v33, %v3394_v54  ;;  %v1657_v33 = vld [vmem:[#allocation2 + $0x230] sm:$0xff] }
 0x2d7   :  { %v3555_v41 = vadd.f32 %v982_v46, %v3390_v44  ;;  %v930_v40 = vadd.f32 %v3429_v4, %v929_v20  ;;  %2890 = vmatpush3.bf16.msra.mxu1 %v2850_v15  ;;  %v1658_v46 = vld [vmem:[#allocation2 + $0x238] sm:$0xff]  ;;  %v1660_v20 = vld [vmem:[#allocation2 + $0x248] sm:$0xff] }
 0x2d8   :  { %v985_v42 = vmax.f32 %v935_v38, 0.0  ;;  %v3594_v23 = vpack.c.bf16 %v1658_v46, %v1657_v33  ;;  %v1659_v38 = vld [vmem:[#allocation2 + $0x240] sm:$0xff] }
 0x2d9   :  { %v984_v58 = vmax.f32 %v930_v40, 0.0  ;;  %v2474_v27 = vpop.f32.mrb[60].mxu0  ;;  %2546 = vmatprep.mubr.f32.mxu1 %v3555_v41  ;;  %v3598_v40 = vpack.c.bf16 %v1660_v20, %v1659_v38 }
 0x2da   :  { %v945_v49 = vadd.f32 %v2474_v27, %v3429_v4  ;;  %v939_v24 = vpop.f32.mrb[61].mxu0  ;;  %2547 = vmatmul.mubr.f32.gmra.mrb[56].mxu1 %v3559_v57  ;;  %v3569_v9 = vadd.f32 %v985_v42, %v3404_v5  ;;  %v1661_v42 = vld [vmem:[#allocation2 + $0x250] sm:$0xff] }
 0x2db   :  { %v3565_v53 = vadd.f32 %v984_v58, %v3400_v48  ;;  %v940_v44 = vadd.f32 %v3429_v4, %v939_v24  ;;  %v1662_v58 = vld [vmem:[#allocation2 + $0x258] sm:$0xff] }
 0x2dc   :  { %v987_v54 = vmax.f32 %v945_v49, 0.0  ;;  %v3602_v27 = vpack.c.bf16 %v1662_v58, %v1661_v42  ;;  %v3610_v49 = vld [vmem:[%s3904_s3 + $0x3] ss:$0 sm:$0xff] }
 0x2dd   :  { %v986_v31 = vmax.f32 %v940_v44, 0.0  ;;  %v2477_v51 = vpop.f32.mrb[62].mxu0  ;;  %2549 = vmatprep.mubr.f32.mxu1 %v3565_v53 }
 0x2de   :  { %v955_v61 = vadd.f32 %v2477_v51, %v3429_v4  ;;  %v949_v28 = vpop.f32.mrb[63].mxu0  ;;  %2550 = vmatmul.mubr.f32.gmra.mrb[58].mxu1 %v3569_v9  ;;  %v3579_v11 = vadd.f32 %v987_v54, %v3414_v18 }
 0x2df   :  { %v3575_v2 = vadd.f32 %v986_v31, %v3410_v52  ;;  %v950_v48 = vadd.f32 %v3429_v4, %v949_v28  ;;  %v1351_v52 = vld [vmem:[#allocation2 + $0x1f0] sm:$0xff]  ;;  %v1352_v4 = vld [vmem:[#allocation2 + $0x1f8] sm:$0xff] }
 0x2e0   :  { %v989_v5 = vmax.f32 %v955_v61, 0.0  ;;  %v2846_v18 = vpack.c.bf16 %v1352_v4, %v1351_v52 }
 0x2e1   :  { %v988_v1 = vmax.f32 %v950_v48, 0.0  ;;  %2552 = vmatprep.mubr.f32.mxu1 %v3575_v2 }
 0x2e2   :  { %2553 = vmatmul.mubr.f32.gmra.mrb[60].mxu1 %v3579_v11  ;;  %v3587_v10 = vadd.f32 %v989_v5, %v3422_v35  ;;  %2847 = vmatprep.subr.bf16.mxu0 %v2846_v18  ;;  %v1655_v35 = vld [vmem:[#allocation2 + $0x220] sm:$0xff] }
 0x2e3   :  { %v3584_v55 = vadd.f32 %v988_v1, %v3419_v25  ;;  %2849 = vmatpush3.bf16.msra.mxu0 %v2846_v18  ;;  %v2854_v25 = vpack.c.bf16 %v1654_v22, %v1653_v39  ;;  %v3591_v36 = vpack.c.bf16 %v1656_v29, %v1655_v35 }
 0x2e4   :  { %2851 = vmatprep.subr.bf16.mxu0 %v2850_v15 }
 0x2e5   :  { %2555 = vmatprep.mubr.f32.mxu1 %v3584_v55  ;;  %2883 = vmatprep.subr.bf16.mxu1 %v2854_v25 }
 0x2e6   :  { %2556 = vmatmul.mubr.f32.gmra.mrb[62].mxu1 %v3587_v10 }
 0x2e7   :  { %2891 = vmatpush3.bf16.msra.mxu1 %v2854_v25 }
 0x2e8   :  { %2884 = vmatprep.subr.bf16.mxu1 %v3591_v36 }
 0x2eb   :  { %2892 = vmatpush3.bf16.msra.mxu1 %v3591_v36 }
 0x2ec   :  { %2885 = vmatprep.subr.bf16.mxu1 %v3594_v23 }
 0x2ef   :  { %2893 = vmatpush3.bf16.msra.mxu1 %v3594_v23 }
 0x2f0   :  { %2886 = vmatprep.subr.bf16.mxu1 %v3598_v40 }
 0x2f3   :  { %2894 = vmatpush3.bf16.msra.mxu1 %v3598_v40 }
 0x2f4   :  { %2887 = vmatprep.subr.bf16.mxu1 %v3602_v27 }
 0x2f7   :  { %2895 = vmatpush3.bf16.msra.mxu1 %v3602_v27 }
 0x37d   :  { %v2512_v24 = vpop.f32.mrb[32].mxu1 }
 0x37e   :  { %v1119_v44 = vadd.f32 %v2512_v24, %v3610_v49  ;;  %v1113_v54 = vpop.f32.mrb[33].mxu1 }
 0x37f   :  { %v1114_v31 = vadd.f32 %v3610_v49, %v1113_v54 }
 0x380   :  { %v1273_v51 = vmax.f32 %v1119_v44, 0.0 }
 0x381   :  { %v1272_v61 = vmax.f32 %v1114_v31, 0.0  ;;  %v2515_v28 = vpop.f32.mrb[34].mxu1 }
 0x382   :  { %v1129_v48 = vadd.f32 %v2515_v28, %v3610_v49  ;;  %v1123_v5 = vpop.f32.mrb[35].mxu1  ;;  %v3620_v4 = vadd.f32 %v1273_v51, %v3439_v56 }
 0x383   :  { %v3616_v1 = vadd.f32 %v1272_v61, %v3435_v12  ;;  %v1124_v52 = vadd.f32 %v3610_v49, %v1123_v5 }
 0x384   :  { %v1275_v18 = vmax.f32 %v1129_v48, 0.0 }
 0x385   :  { %v1274_v32 = vmax.f32 %v1124_v52, 0.0  ;;  %v2518_v14 = vpop.f32.mrb[36].mxu1  ;;  %2590 = vmatprep.mubr.f32.mxu0 %v3616_v1 }
 0x386   :  { %v1139_v39 = vadd.f32 %v2518_v14, %v3610_v49  ;;  %v1133_v22 = vpop.f32.mrb[37].mxu1  ;;  %2591 = vmatmul.mubr.f32.vlgmr.msra.gmra.mrb[64].mxu0 %v3620_v4  ;;  %v3630_v29 = vadd.f32 %v1275_v18, %v3449_v17 }
 0x387   :  { %v3626_v35 = vadd.f32 %v1274_v32, %v3445_v59  ;;  %v1134_v12 = vadd.f32 %v3610_v49, %v1133_v22  ;;  %2853 = vmatpush3.bf16.msra.mxu0 %v2850_v15 }
 0x388   :  { %v1277_v56 = vmax.f32 %v1139_v39, 0.0  ;;  %2855 = vmatprep.subr.bf16.mxu0 %v2854_v25 }
 0x389   :  { %v1276_v33 = vmax.f32 %v1134_v12, 0.0  ;;  %v2521_v46 = vpop.f32.mrb[38].mxu1  ;;  %2593 = vmatprep.mubr.f32.mxu0 %v3626_v35 }
 0x38a   :  { %v1149_v38 = vadd.f32 %v2521_v46, %v3610_v49  ;;  %v1143_v20 = vpop.f32.mrb[39].mxu1  ;;  %2594 = vmatmul.mubr.f32.gmra.mrb[66].mxu0 %v3630_v29  ;;  %v3640_v17 = vadd.f32 %v1277_v56, %v3459_v63 }
 0x38b   :  { %v3636_v59 = vadd.f32 %v1276_v33, %v3455_v43  ;;  %v1144_v42 = vadd.f32 %v3610_v49, %v1143_v20  ;;  %2857 = vmatpush3.bf16.msra.mxu0 %v2854_v25 }
 0x38c   :  { %v1279_v15 = vmax.f32 %v1149_v38, 0.0  ;;  %2859 = vmatprep.subr.bf16.mxu0 %v3591_v36 }
 0x38d   :  { %v1278_v58 = vmax.f32 %v1144_v42, 0.0  ;;  %v2524_v24 = vpop.f32.mrb[40].mxu1  ;;  %2596 = vmatprep.mubr.f32.mxu0 %v3636_v59 }
 0x38e   :  { %v1159_v44 = vadd.f32 %v2524_v24, %v3610_v49  ;;  %v1153_v54 = vpop.f32.mrb[41].mxu1  ;;  %2597 = vmatmul.mubr.f32.gmra.mrb[68].mxu0 %v3640_v17  ;;  %v3652_v63 = vadd.f32 %v1279_v15, %v3469_v3 }
 0x38f   :  { %v3647_v43 = vadd.f32 %v1278_v58, %v3465_v47  ;;  %v1154_v25 = vadd.f32 %v3610_v49, %v1153_v54  ;;  %2861 = vmatpush3.bf16.msra.mxu0 %v3591_v36 }
 0x390   :  { %v1281_v31 = vmax.f32 %v1159_v44, 0.0  ;;  %2863 = vmatprep.subr.bf16.mxu0 %v3594_v23 }
 0x391   :  { %v1280_v51 = vmax.f32 %v1154_v25, 0.0  ;;  %v2527_v61 = vpop.f32.mrb[42].mxu1  ;;  %2599 = vmatprep.mubr.f32.mxu0 %v3647_v43 }
 0x392   :  { %v1169_v28 = vadd.f32 %v2527_v61, %v3610_v49  ;;  %v1163_v48 = vpop.f32.mrb[43].mxu1  ;;  %2600 = vmatmul.mubr.f32.gmra.mrb[70].mxu0 %v3652_v63  ;;  %v3664_v3 = vadd.f32 %v1281_v31, %v3479_v8 }
 0x393   :  { %v3659_v47 = vadd.f32 %v1280_v51, %v3475_v7  ;;  %v1164_v36 = vadd.f32 %v3610_v49, %v1163_v48  ;;  %2865 = vmatpush3.bf16.msra.mxu0 %v3594_v23 }
 0x394   :  { %v1283_v5 = vmax.f32 %v1169_v28, 0.0  ;;  %2867 = vmatprep.subr.bf16.mxu0 %v3598_v40 }
 0x395   :  { %v1282_v52 = vmax.f32 %v1164_v36, 0.0  ;;  %v2530_v18 = vpop.f32.mrb[44].mxu1  ;;  %2602 = vmatprep.mubr.f32.mxu0 %v3659_v47 }
 0x396   :  { %v1179_v32 = vadd.f32 %v2530_v18, %v3610_v49  ;;  %v1173_v14 = vpop.f32.mrb[45].mxu1  ;;  %2603 = vmatmul.mubr.f32.gmra.mrb[72].mxu0 %v3664_v3  ;;  %v3676_v8 = vadd.f32 %v1283_v5, %v3489_v37 }
 0x397   :  { %v3671_v7 = vadd.f32 %v1282_v52, %v3485_v34  ;;  %v1174_v23 = vadd.f32 %v3610_v49, %v1173_v14  ;;  %2869 = vmatpush3.bf16.msra.mxu0 %v3598_v40 }
 0x398   :  { %v1285_v39 = vmax.f32 %v1179_v32, 0.0  ;;  %2871 = vmatprep.subr.bf16.mxu0 %v3602_v27 }
 0x399   :  { %v1284_v22 = vmax.f32 %v1174_v23, 0.0  ;;  %v2533_v12 = vpop.f32.mrb[46].mxu1  ;;  %2605 = vmatprep.mubr.f32.mxu0 %v3671_v7 }
 0x39a   :  { %v1189_v56 = vadd.f32 %v2533_v12, %v3610_v49  ;;  %v1183_v33 = vpop.f32.mrb[47].mxu1  ;;  %2606 = vmatmul.mubr.f32.gmra.mrb[74].mxu0 %v3676_v8  ;;  %v3688_v37 = vadd.f32 %v1285_v39, %v3499_v60 }
 0x39b   :  { %v3683_v34 = vadd.f32 %v1284_v22, %v3495_v26  ;;  %v1184_v40 = vadd.f32 %v3610_v49, %v1183_v33  ;;  %2873 = vmatpush3.bf16.msra.mxu0 %v3602_v27 }
 0x39c   :  { %v1287_v46 = vmax.f32 %v1189_v56, 0.0 }
 0x39d   :  { %v1286_v38 = vmax.f32 %v1184_v40, 0.0  ;;  %v2536_v20 = vpop.f32.mrb[48].mxu1  ;;  %2608 = vmatprep.mubr.f32.mxu0 %v3683_v34 }
 0x39e   :  { %v1199_v42 = vadd.f32 %v2536_v20, %v3610_v49  ;;  %v1193_v15 = vpop.f32.mrb[49].mxu1  ;;  %2609 = vmatmul.mubr.f32.gmra.mrb[76].mxu0 %v3688_v37  ;;  %v3698_v27 = vadd.f32 %v1287_v46, %v3509_v0 }
 0x39f   :  { %v3694_v26 = vadd.f32 %v1286_v38, %v3505_v16  ;;  %v1194_v58 = vadd.f32 %v3610_v49, %v1193_v15 }
 0x3a0   :  { %v1289_v60 = vmax.f32 %v1199_v42, 0.0 }
 0x3a1   :  { %v1288_v24 = vmax.f32 %v1194_v58, 0.0  ;;  %v2539_v44 = vpop.f32.mrb[50].mxu1  ;;  %2611 = vmatprep.mubr.f32.mxu0 %v3694_v26 }
 0x3a2   :  { %v1209_v54 = vadd.f32 %v2539_v44, %v3610_v49  ;;  %v1203_v25 = vpop.f32.mrb[51].mxu1  ;;  %2612 = vmatmul.mubr.f32.gmra.mrb[78].mxu0 %v3698_v27  ;;  %v3708_v51 = vadd.f32 %v1289_v60, %v3519_v6 }
 0x3a3   :  { %v3704_v31 = vadd.f32 %v1288_v24, %v3515_v50  ;;  %v1204_v16 = vadd.f32 %v3610_v49, %v1203_v25 }
 0x3a4   :  { %v1291_v0 = vmax.f32 %v1209_v54, 0.0 }
 0x3a5   :  { %v1290_v61 = vmax.f32 %v1204_v16, 0.0  ;;  %v2542_v28 = vpop.f32.mrb[52].mxu1  ;;  %2614 = vmatprep.mubr.f32.mxu0 %v3704_v31 }
 0x3a6   :  { %v1219_v48 = vadd.f32 %v2542_v28, %v3610_v49  ;;  %v1213_v36 = vpop.f32.mrb[53].mxu1  ;;  %2615 = vmatmul.mubr.f32.gmra.mrb[80].mxu0 %v3708_v51  ;;  %v3718_v52 = vadd.f32 %v1291_v0, %v3529_v21 }
 0x3a7   :  { %v3714_v5 = vadd.f32 %v1290_v61, %v3525_v62  ;;  %v1214_v50 = vadd.f32 %v3610_v49, %v1213_v36 }
 0x3a8   :  { %v1293_v6 = vmax.f32 %v1219_v48, 0.0 }
 0x3a9   :  { %v1292_v18 = vmax.f32 %v1214_v50, 0.0  ;;  %v2545_v32 = vpop.f32.mrb[54].mxu1  ;;  %2617 = vmatprep.mubr.f32.mxu0 %v3714_v5 }
 0x3aa   :  { %v1229_v14 = vadd.f32 %v2545_v32, %v3610_v49  ;;  %v1223_v23 = vpop.f32.mrb[55].mxu1  ;;  %2618 = vmatmul.mubr.f32.gmra.mrb[82].mxu0 %v3718_v52  ;;  %v3728_v22 = vadd.f32 %v1293_v6, %v3539_v19 }
 0x3ab   :  { %v3724_v39 = vadd.f32 %v1292_v18, %v3535_v13  ;;  %v1224_v62 = vadd.f32 %v3610_v49, %v1223_v23 }
 0x3ac   :  { %v1295_v21 = vmax.f32 %v1229_v14, 0.0 }
 0x3ad   :  { %v1294_v12 = vmax.f32 %v1224_v62, 0.0  ;;  %v2548_v56 = vpop.f32.mrb[56].mxu1  ;;  %2620 = vmatprep.mubr.f32.mxu0 %v3724_v39  ;;  %v1665_v62 = vld [vmem:[#allocation2 + $0x270] sm:$0xff] }
 0x3ae   :  { %v1239_v33 = vadd.f32 %v2548_v56, %v3610_v49  ;;  %v1233_v40 = vpop.f32.mrb[57].mxu1  ;;  %2621 = vmatmul.mubr.f32.gmra.mrb[84].mxu0 %v3728_v22  ;;  %v3738_v38 = vadd.f32 %v1295_v21, %v3549_v45  ;;  %v1666_v21 = vld [vmem:[#allocation2 + $0x278] sm:$0xff] }
 0x3af   :  { %v3734_v46 = vadd.f32 %v1294_v12, %v3545_v30  ;;  %v1234_v13 = vadd.f32 %v3610_v49, %v1233_v40  ;;  %v2878_v12 = vpack.c.bf16 %v1666_v21, %v1665_v62 }
 0x3b0   :  { %v1297_v19 = vmax.f32 %v1239_v33, 0.0 }
 0x3b1   :  { %v1296_v20 = vmax.f32 %v1234_v13, 0.0  ;;  %v2551_v42 = vpop.f32.mrb[58].mxu1  ;;  %2623 = vmatprep.mubr.f32.mxu0 %v3734_v46 }
 0x3b2   :  { %v1249_v15 = vadd.f32 %v2551_v42, %v3610_v49  ;;  %v1243_v58 = vpop.f32.mrb[59].mxu1  ;;  %2624 = vmatmul.mubr.f32.gmra.mrb[86].mxu0 %v3738_v38  ;;  %v3748_v24 = vadd.f32 %v1297_v19, %v3559_v57 }
 0x3b3   :  { %v3744_v60 = vadd.f32 %v1296_v20, %v3555_v41  ;;  %v1244_v30 = vadd.f32 %v3610_v49, %v1243_v58 }
 0x3b4   :  { %v1299_v45 = vmax.f32 %v1249_v15, 0.0 }
 0x3b5   :  { %v1298_v44 = vmax.f32 %v1244_v30, 0.0  ;;  %v2554_v54 = vpop.f32.mrb[60].mxu1  ;;  %2626 = vmatprep.mubr.f32.mxu0 %v3744_v60 }
 0x3b6   :  { %v1259_v25 = vadd.f32 %v2554_v54, %v3610_v49  ;;  %v1253_v16 = vpop.f32.mrb[61].mxu1  ;;  %2627 = vmatmul.mubr.f32.gmra.mrb[88].mxu0 %v3748_v24  ;;  %v3758_v61 = vadd.f32 %v1299_v45, %v3569_v9 }
 0x3b7   :  { %v3754_v0 = vadd.f32 %v1298_v44, %v3565_v53  ;;  %v1254_v41 = vadd.f32 %v3610_v49, %v1253_v16 }
 0x3b8   :  { %v1301_v57 = vmax.f32 %v1259_v25, 0.0 }
 0x3b9   :  { %v1300_v28 = vmax.f32 %v1254_v41, 0.0  ;;  %v2557_v48 = vpop.f32.mrb[62].mxu1  ;;  %2629 = vmatprep.mubr.f32.mxu0 %v3754_v0 }
 0x3ba   :  { %v1269_v36 = vadd.f32 %v2557_v48, %v3610_v49  ;;  %v1263_v50 = vpop.f32.mrb[63].mxu1  ;;  %2630 = vmatmul.mubr.f32.gmra.mrb[90].mxu0 %v3758_v61  ;;  %v3768_v18 = vadd.f32 %v1301_v57, %v3579_v11 }
 0x3bb   :  { %v3764_v6 = vadd.f32 %v1300_v28, %v3575_v2  ;;  %v1264_v53 = vadd.f32 %v3610_v49, %v1263_v50  ;;  %v1663_v2 = vld [vmem:[#allocation2 + $0x260] sm:$0xff]  ;;  %v1664_v49 = vld [vmem:[#allocation2 + $0x268] sm:$0xff] }
 0x3bc   :  { %v1303_v9 = vmax.f32 %v1269_v36, 0.0  ;;  %v2874_v11 = vpack.c.bf16 %v1664_v49, %v1663_v2 }
 0x3bd   :  { %v1302_v32 = vmax.f32 %v1264_v53, 0.0  ;;  %2632 = vmatprep.mubr.f32.mxu0 %v3764_v6 }
 0x3be   :  { %2633 = vmatmul.mubr.f32.gmra.mrb[92].mxu0 %v3768_v18  ;;  %v3776_v23 = vadd.f32 %v1303_v9, %v3587_v10  ;;  %2875 = vmatprep.subr.bf16.mxu0 %v2874_v11 }
 0x3bf   :  { %v3773_v14 = vadd.f32 %v1302_v32, %v3584_v55  ;;  %2888 = vmatprep.subr.bf16.mxu1 %v2874_v11  ;;  %2877 = vmatpush3.bf16.msra.mxu0 %v2874_v11  ;;  %v3783_v55 = vld [vmem:[%s3904_s3 + $0x4] ss:$0 sm:$0xff] }
 0x3c0   :  { %2896 = vmatpush3.bf16.msra.mxu1 %v2874_v11  ;;  %2879 = vmatprep.subr.bf16.mxu0 %v2878_v12 }
 0x3c1   :  { %2635 = vmatprep.mubr.f32.mxu0 %v3773_v14  ;;  %2889 = vmatprep.subr.bf16.mxu1 %v2878_v12 }
 0x3c2   :  { %2636 = vmatmul.mubr.f32.gmra.mrb[94].mxu0 %v3776_v23 }
 0x3c3   :  { %2881 = vmatpush3.bf16.msra.mxu0 %v2878_v12 }
 0x3c4   :  { %2897 = vmatpush3.bf16.msra.mxu1 %v2878_v12 }
 0x459   :  { %v2592_v10 = vpop.f32.mrb[64].mxu0 }
 0x45a   :  { %v1433_v56 = vadd.f32 %v2592_v10, %v3783_v55  ;;  %v1427_v33 = vpop.f32.mrb[65].mxu0 }
 0x45b   :  { %v1428_v40 = vadd.f32 %v3783_v55, %v1427_v33 }
 0x45c   :  { %v1587_v13 = vmax.f32 %v1433_v56, 0.0 }
 0x45d   :  { %v1586_v19 = vmax.f32 %v1428_v40, 0.0  ;;  %v2595_v20 = vpop.f32.mrb[66].mxu0 }
 0x45e   :  { %v1443_v42 = vadd.f32 %v2595_v20, %v3783_v55  ;;  %v1437_v15 = vpop.f32.mrb[67].mxu0  ;;  %v1619_v45 = vadd.f32 %v1587_v13, %v3620_v4 }
 0x45f   :  { %v1618_v58 = vadd.f32 %v1586_v19, %v3616_v1  ;;  %v1438_v30 = vadd.f32 %v3783_v55, %v1437_v15 }
 0x460   :  { %v1589_v44 = vmax.f32 %v1443_v42, 0.0 }
 0x461   :  { %v1588_v54 = vmax.f32 %v1438_v30, 0.0  ;;  %v2598_v25 = vpop.f32.mrb[68].mxu0  ;;  %2670 = vmatprep.mubr.f32.mxu0 %v1618_v58 }
 0x462   :  { %v1453_v16 = vadd.f32 %v2598_v25, %v3783_v55  ;;  %v1447_v41 = vpop.f32.mrb[69].mxu0  ;;  %2671 = vmatmul.mubr.f32.vlgmr.msra.gmra.mrb[96].mxu0 %v1619_v45  ;;  %v1621_v48 = vadd.f32 %v1589_v44, %v3630_v29 }
 0x463   :  { %v1620_v57 = vadd.f32 %v1588_v54, %v3626_v35  ;;  %v1448_v28 = vadd.f32 %v3783_v55, %v1447_v41 }
 0x464   :  { %v1591_v36 = vmax.f32 %v1453_v16, 0.0 }
 0x465   :  { %v1590_v1 = vmax.f32 %v1448_v28, 0.0  ;;  %v2601_v50 = vpop.f32.mrb[70].mxu0  ;;  %2673 = vmatprep.mubr.f32.mxu0 %v1620_v57 }
 0x466   :  { %v1463_v4 = vadd.f32 %v2601_v50, %v3783_v55  ;;  %v1457_v53 = vpop.f32.mrb[71].mxu0  ;;  %2674 = vmatmul.mubr.f32.gmra.mrb[98].mxu0 %v1621_v48  ;;  %v1623_v2 = vadd.f32 %v1591_v36, %v3640_v17 }
 0x467   :  { %v1622_v9 = vadd.f32 %v1590_v1, %v3636_v59  ;;  %v1458_v32 = vadd.f32 %v3783_v55, %v1457_v53 }
 0x468   :  { %v1593_v49 = vmax.f32 %v1463_v4, 0.0 }
 0x469   :  { %v1592_v35 = vmax.f32 %v1458_v32, 0.0  ;;  %v2604_v11 = vpop.f32.mrb[72].mxu0  ;;  %2676 = vmatprep.mubr.f32.mxu0 %v1622_v9 }
 0x46a   :  { %v1473_v29 = vadd.f32 %v2604_v11, %v3783_v55  ;;  %v1467_v62 = vpop.f32.mrb[73].mxu0  ;;  %2677 = vmatmul.mubr.f32.gmra.mrb[100].mxu0 %v1623_v2  ;;  %v1625_v10 = vadd.f32 %v1593_v49, %v3652_v63 }
 0x46b   :  { %v1624_v21 = vadd.f32 %v1592_v35, %v3647_v43  ;;  %v1468_v12 = vadd.f32 %v3783_v55, %v1467_v62 }
 0x46c   :  { %v1595_v56 = vmax.f32 %v1473_v29, 0.0 }
 0x46d   :  { %v1594_v59 = vmax.f32 %v1468_v12, 0.0  ;;  %v2607_v33 = vpop.f32.mrb[74].mxu0  ;;  %2679 = vmatprep.mubr.f32.mxu1 %v1624_v21 }
 0x46e   :  { %v1483_v17 = vadd.f32 %v2607_v33, %v3783_v55  ;;  %v1477_v40 = vpop.f32.mrb[75].mxu0  ;;  %2680 = vmatmul.mubr.f32.vlgmr.msra.gmra.mrb[64].mxu1 %v1625_v10  ;;  %v1627_v20 = vadd.f32 %v1595_v56, %v3664_v3 }
 0x46f   :  { %v1626_v13 = vadd.f32 %v1594_v59, %v3659_v47  ;;  %v1478_v19 = vadd.f32 %v3783_v55, %v1477_v40 }
 0x470   :  { %v1597_v42 = vmax.f32 %v1483_v17, 0.0 }
 0x471   :  { %v1596_v43 = vmax.f32 %v1478_v19, 0.0  ;;  %v2610_v15 = vpop.f32.mrb[76].mxu0  ;;  %2682 = vmatprep.mubr.f32.mxu1 %v1626_v13 }
 0x472   :  { %v1493_v63 = vadd.f32 %v2610_v15, %v3783_v55  ;;  %v1487_v58 = vpop.f32.mrb[77].mxu0  ;;  %2683 = vmatmul.mubr.f32.gmra.mrb[66].mxu1 %v1627_v20  ;;  %v1629_v44 = vadd.f32 %v1597_v42, %v3676_v8 }
 0x473   :  { %v1628_v30 = vadd.f32 %v1596_v43, %v3671_v7  ;;  %v1488_v45 = vadd.f32 %v3783_v55, %v1487_v58 }
 0x474   :  { %v1599_v54 = vmax.f32 %v1493_v63, 0.0 }
 0x475   :  { %v1598_v47 = vmax.f32 %v1488_v45, 0.0  ;;  %v2613_v25 = vpop.f32.mrb[78].mxu0  ;;  %2685 = vmatprep.mubr.f32.mxu1 %v1628_v30 }
 0x476   :  { %v1503_v3 = vadd.f32 %v2613_v25, %v3783_v55  ;;  %v1497_v16 = vpop.f32.mrb[79].mxu0  ;;  %2686 = vmatmul.mubr.f32.gmra.mrb[68].mxu1 %v1629_v44  ;;  %v1631_v28 = vadd.f32 %v1599_v54, %v3688_v37 }
 0x477   :  { %v1630_v41 = vadd.f32 %v1598_v47, %v3683_v34  ;;  %v1498_v57 = vadd.f32 %v3783_v55, %v1497_v16 }
 0x478   :  { %v1601_v48 = vmax.f32 %v1503_v3, 0.0 }
 0x479   :  { %v1600_v7 = vmax.f32 %v1498_v57, 0.0  ;;  %v2616_v36 = vpop.f32.mrb[80].mxu0  ;;  %2688 = vmatprep.mubr.f32.mxu1 %v1630_v41 }
 0x47a   :  { %v1513_v8 = vadd.f32 %v2616_v36, %v3783_v55  ;;  %v1507_v1 = vpop.f32.mrb[81].mxu0  ;;  %2689 = vmatmul.mubr.f32.gmra.mrb[70].mxu1 %v1631_v28  ;;  %v1633_v53 = vadd.f32 %v1601_v48, %v3698_v27 }
 0x47b   :  { %v1632_v50 = vadd.f32 %v1600_v7, %v3694_v26  ;;  %v1508_v4 = vadd.f32 %v3783_v55, %v1507_v1 }
 0x47c   :  { %v1603_v9 = vmax.f32 %v1513_v8, 0.0 }
 0x47d   :  { %v1602_v34 = vmax.f32 %v1508_v4, 0.0  ;;  %v2619_v32 = vpop.f32.mrb[82].mxu0  ;;  %2691 = vmatprep.mubr.f32.mxu1 %v1632_v50 }
 0x47e   :  { %v1523_v37 = vadd.f32 %v2619_v32, %v3783_v55  ;;  %v1517_v2 = vpop.f32.mrb[83].mxu0  ;;  %2692 = vmatmul.mubr.f32.gmra.mrb[72].mxu1 %v1633_v53  ;;  %v1635_v11 = vadd.f32 %v1603_v9, %v3708_v51 }
 0x47f   :  { %v1634_v49 = vadd.f32 %v1602_v34, %v3704_v31  ;;  %v1518_v35 = vadd.f32 %v3783_v55, %v1517_v2  ;;  %v3852_v34 = vld [vmem:[%s3904_s3 + $0x5] ss:$0 sm:$0xff]  ;;  %s2953_s3 = smov [#allocation5]  }
 0x480   :  { %v1605_v29 = vmax.f32 %v1523_v37, 0.0  ;;  %s1937_s30 = sshll.u32 %s2953_s3, 4  ;;  %s1938_s30 = int_to_ptr.vmem [resolvable:$true] %s1937_s30 }
 0x481   :  { %v1604_v26 = vmax.f32 %v1518_v35, 0.0  ;;  %v2622_v62 = vpop.f32.mrb[84].mxu0  ;;  %2694 = vmatprep.mubr.f32.mxu1 %v1634_v49  ;;  %s2924_s5 = scalar_lea.vmem %s1938_s30, 4096  ;;  %p2929_p9 = scmp.lt.s32.totalorder %s1938_s30, %s1938_s30 }
 0x482   :  { %v1533_v27 = vadd.f32 %v2622_v62, %v3783_v55  ;;  %v1527_v21 = vpop.f32.mrb[85].mxu0  ;;  %2695 = vmatmul.mubr.f32.gmra.mrb[74].mxu1 %v1635_v11  ;;  %v1637_v56 = vadd.f32 %v1605_v29, %v3718_v52  ;;  %p2925_p8 = scmp.ne.s32.totalorder %s1938_s30, %s2924_s5  ;;  %p2930_p10 = scmp.lt.s32.totalorder %s2924_s5, %s2924_s5 }
 0x483   :  { %v1636_v12 = vadd.f32 %v1604_v26, %v3714_v5  ;;  %v1528_v10 = vadd.f32 %v3783_v55, %v1527_v21 }
 0x484   :  { %v1607_v59 = vmax.f32 %v1533_v27, 0.0  ;;  %p2931_p11 = por %p2930_p10, %p2929_p9 }
 0x485   :  { %v1606_v31 = vmax.f32 %v1528_v10, 0.0  ;;  %v2625_v33 = vpop.f32.mrb[86].mxu0  ;;  %2697 = vmatprep.mubr.f32.mxu1 %v1636_v12 }
 0x486   :  { %v1543_v51 = vadd.f32 %v2625_v33, %v3783_v55  ;;  %v1537_v17 = vpop.f32.mrb[87].mxu0  ;;  %2698 = vmatmul.mubr.f32.gmra.mrb[76].mxu1 %v1637_v56  ;;  %v1639_v19 = vadd.f32 %v1607_v59, %v3728_v22  ;;  %p2932_p12 = pnand %p2931_p11, %p2925_p8 }
 0x487   :  { %v1638_v40 = vadd.f32 %v1606_v31, %v3724_v39  ;;  %v1538_v13 = vadd.f32 %v3783_v55, %v1537_v17 }
 0x488   :  { %v1609_v20 = vmax.f32 %v1543_v51, 0.0 }
 0x489   :  { %v1608_v5 = vmax.f32 %v1538_v13, 0.0  ;;  %v2628_v42 = vpop.f32.mrb[88].mxu0  ;;  %2700 = vmatprep.mubr.f32.mxu1 %v1638_v40 }
 0x48a   :  { %v1553_v52 = vadd.f32 %v2628_v42, %v3783_v55  ;;  %v1547_v43 = vpop.f32.mrb[89].mxu0  ;;  %2701 = vmatmul.mubr.f32.gmra.mrb[78].mxu1 %v1639_v19  ;;  %v1641_v58 = vadd.f32 %v1609_v20, %v3738_v38 }
 0x48b   :  { %v1640_v15 = vadd.f32 %v1608_v5, %v3734_v46  ;;  %v1548_v63 = vadd.f32 %v3783_v55, %v1547_v43 }
 0x48c   :  { %v1611_v30 = vmax.f32 %v1553_v52, 0.0 }
 0x48d   :  { %v1610_v39 = vmax.f32 %v1548_v63, 0.0  ;;  %v2631_v45 = vpop.f32.mrb[90].mxu0  ;;  %2703 = vmatprep.mubr.f32.mxu1 %v1640_v15 }
 0x48e   :  { %v1563_v22 = vadd.f32 %v2631_v45, %v3783_v55  ;;  %v1557_v44 = vpop.f32.mrb[91].mxu0  ;;  %2704 = vmatmul.mubr.f32.gmra.mrb[80].mxu1 %v1641_v58  ;;  %v1643_v25 = vadd.f32 %v1611_v30, %v3748_v24 }
 0x48f   :  { %v1642_v54 = vadd.f32 %v1610_v39, %v3744_v60  ;;  %v1558_v47 = vadd.f32 %v3783_v55, %v1557_v44 }
 0x490   :  { %v1613_v3 = vmax.f32 %v1563_v22, 0.0 }
 0x491   :  { %v1612_v46 = vmax.f32 %v1558_v47, 0.0  ;;  %v2634_v16 = vpop.f32.mrb[92].mxu0  ;;  %2706 = vmatprep.mubr.f32.mxu1 %v1642_v54 }
 0x492   :  { %v1573_v38 = vadd.f32 %v2634_v16, %v3783_v55  ;;  %v1567_v41 = vpop.f32.mrb[93].mxu0  ;;  %2707 = vmatmul.mubr.f32.gmra.mrb[82].mxu1 %v1643_v25  ;;  %v1645_v48 = vadd.f32 %v1613_v3, %v3758_v61 }
 0x493   :  { %v1644_v57 = vadd.f32 %v1612_v46, %v3754_v0  ;;  %v1568_v28 = vadd.f32 %v3783_v55, %v1567_v41 }
 0x494   :  { %v1615_v7 = vmax.f32 %v1573_v38, 0.0 }
 0x495   :  { %v1614_v60 = vmax.f32 %v1568_v28, 0.0  ;;  %v2637_v36 = vpop.f32.mrb[94].mxu0  ;;  %2709 = vmatprep.mubr.f32.mxu1 %v1644_v57 }
 0x496   :  { %v1583_v24 = vadd.f32 %v2637_v36, %v3783_v55  ;;  %v1577_v8 = vpop.f32.mrb[95].mxu0  ;;  %2710 = vmatmul.mubr.f32.gmra.mrb[84].mxu1 %v1645_v48  ;;  %v1647_v4 = vadd.f32 %v1615_v7, %v3768_v18 }
 0x497   :  { %v1646_v1 = vadd.f32 %v1614_v60, %v3764_v6  ;;  %v1578_v50 = vadd.f32 %v3783_v55, %v1577_v8 }
 0x498   :  { %v1617_v53 = vmax.f32 %v1583_v24, 0.0 }
 0x499   :  { %v1616_v0 = vmax.f32 %v1578_v50, 0.0  ;;  %2712 = vmatprep.mubr.f32.mxu1 %v1646_v1 }
 0x49a   :  { %2713 = vmatmul.mubr.f32.gmra.mrb[86].mxu1 %v1647_v4  ;;  %v1649_v9 = vadd.f32 %v1617_v53, %v3776_v23 }
 0x49b   :  { %v1648_v61 = vadd.f32 %v1616_v0, %v3773_v14 }
 0x49d   :  { %2715 = vmatprep.mubr.f32.mxu1 %v1648_v61 }
 0x49e   :  { %2716 = vmatmul.mubr.f32.gmra.mrb[88].mxu1 %v1649_v9 }
 0x535   :  { %v2672_v6 = vpop.f32.mrb[96].mxu0 }
 0x536   :  { %v1747_v55 = vadd.f32 %v2672_v6, %v3852_v34  ;;  %v1741_v32 = vpop.f32.mrb[97].mxu0 }
 0x537   :  { %v1742_v18 = vadd.f32 %v3852_v34, %v1741_v32 }
 0x538   :  { %1901 = vst [vmem:[#allocation5 + $0x8] sm:$0xff] %v1747_v55 }
 0x539   :  { %1900 = vst [vmem:[#allocation5] sm:$0xff] %v1742_v18  ;;  %v2675_v37 = vpop.f32.mrb[98].mxu0 }
 0x53a   :  { %v1757_v14 = vadd.f32 %v2675_v37, %v3852_v34  ;;  %v1751_v2 = vpop.f32.mrb[99].mxu0 }
 0x53b   :  { %v1752_v23 = vadd.f32 %v3852_v34, %v1751_v2 }
 0x53c   :  { %1903 = vst [vmem:[#allocation5 + $0x18] sm:$0xff] %v1757_v14 }
 0x53d   :  { %1902 = vst [vmem:[#allocation5 + $0x10] sm:$0xff] %v1752_v23  ;;  %v2678_v49 = vpop.f32.mrb[100].mxu0 }
 0x53e   :  { %v1767_v35 = vadd.f32 %v2678_v49, %v3852_v34  ;;  %v1761_v11 = vpop.f32.mrb[101].mxu0 }
 0x53f   :  { %v1762_v29 = vadd.f32 %v3852_v34, %v1761_v11 }
 0x540   :  { %1905 = vst [vmem:[#allocation5 + $0x28] sm:$0xff] %v1767_v35 }
 0x541   :  { %1904 = vst [vmem:[#allocation5 + $0x20] sm:$0xff] %v1762_v29  ;;  %v2681_v26 = vpop.f32.mrb[64].mxu1 }
 0x542   :  { %v1777_v62 = vadd.f32 %v2681_v26, %v3852_v34  ;;  %v1771_v27 = vpop.f32.mrb[65].mxu1 }
 0x543   :  { %v1772_v21 = vadd.f32 %v3852_v34, %v1771_v27 }
 0x544   :  { %1907 = vst [vmem:[#allocation5 + $0x38] sm:$0xff] %v1777_v62 }
 0x545   :  { %1906 = vst [vmem:[#allocation5 + $0x30] sm:$0xff] %v1772_v21  ;;  %v2684_v12 = vpop.f32.mrb[66].mxu1 }
 0x546   :  { %v1787_v10 = vadd.f32 %v2684_v12, %v3852_v34  ;;  %v1781_v56 = vpop.f32.mrb[67].mxu1 }
 0x547   :  { %v1782_v59 = vadd.f32 %v3852_v34, %v1781_v56 }
 0x548   :  { %1909 = vst [vmem:[#allocation5 + $0x48] sm:$0xff] %v1787_v10 }
 0x549   :  { %1908 = vst [vmem:[#allocation5 + $0x40] sm:$0xff] %v1782_v59  ;;  %v2687_v31 = vpop.f32.mrb[68].mxu1 }
 0x54a   :  { %v1797_v33 = vadd.f32 %v2687_v31, %v3852_v34  ;;  %v1791_v51 = vpop.f32.mrb[69].mxu1 }
 0x54b   :  { %v1792_v17 = vadd.f32 %v3852_v34, %v1791_v51 }
 0x54c   :  { %1911 = vst [vmem:[#allocation5 + $0x58] sm:$0xff] %v1797_v33 }
 0x54d   :  { %1910 = vst [vmem:[#allocation5 + $0x50] sm:$0xff] %v1792_v17  ;;  %v2690_v40 = vpop.f32.mrb[70].mxu1 }
 0x54e   :  { %v1807_v13 = vadd.f32 %v2690_v40, %v3852_v34  ;;  %v1801_v19 = vpop.f32.mrb[71].mxu1 }
 0x54f   :  { %v1802_v20 = vadd.f32 %v3852_v34, %v1801_v19 }
 0x550   :  { %1913 = vst [vmem:[#allocation5 + $0x68] sm:$0xff] %v1807_v13 }
 0x551   :  { %1912 = vst [vmem:[#allocation5 + $0x60] sm:$0xff] %v1802_v20  ;;  %v2693_v5 = vpop.f32.mrb[72].mxu1 }
 0x552   :  { %v1817_v42 = vadd.f32 %v2693_v5, %v3852_v34  ;;  %v1811_v52 = vpop.f32.mrb[73].mxu1 }
 0x553   :  { %v1812_v43 = vadd.f32 %v3852_v34, %v1811_v52 }
 0x554   :  { %1915 = vst [vmem:[#allocation5 + $0x78] sm:$0xff] %v1817_v42 }
 0x555   :  { %1914 = vst [vmem:[#allocation5 + $0x70] sm:$0xff] %v1812_v43  ;;  %v2696_v15 = vpop.f32.mrb[74].mxu1 }
 0x556   :  { %v1827_v63 = vadd.f32 %v2696_v15, %v3852_v34  ;;  %v1821_v58 = vpop.f32.mrb[75].mxu1 }
 0x557   :  { %v1822_v30 = vadd.f32 %v3852_v34, %v1821_v58 }
 0x558   :  { %1917 = vst [vmem:[#allocation5 + $0x88] sm:$0xff] %v1827_v63 }
 0x559   :  { %1916 = vst [vmem:[#allocation5 + $0x80] sm:$0xff] %v1822_v30  ;;  %v2699_v39 = vpop.f32.mrb[76].mxu1 }
 0x55a   :  { %v1837_v45 = vadd.f32 %v2699_v39, %v3852_v34  ;;  %v1831_v22 = vpop.f32.mrb[77].mxu1 }
 0x55b   :  { %v1832_v44 = vadd.f32 %v3852_v34, %v1831_v22 }
 0x55c   :  { %1919 = vst [vmem:[#allocation5 + $0x98] sm:$0xff] %v1837_v45 }
 0x55d   :  { %1918 = vst [vmem:[#allocation5 + $0x90] sm:$0xff] %v1832_v44  ;;  %v2702_v54 = vpop.f32.mrb[78].mxu1 }
 0x55e   :  { %v1847_v47 = vadd.f32 %v2702_v54, %v3852_v34  ;;  %v1841_v25 = vpop.f32.mrb[79].mxu1 }
 0x55f   :  { %v1842_v3 = vadd.f32 %v3852_v34, %v1841_v25 }
 0x560   :  { %1921 = vst [vmem:[#allocation5 + $0xa8] sm:$0xff] %v1847_v47 }
 0x561   :  { %1920 = vst [vmem:[#allocation5 + $0xa0] sm:$0xff] %v1842_v3  ;;  %v2705_v46 = vpop.f32.mrb[80].mxu1 }
 0x562   :  { %v1857_v16 = vadd.f32 %v2705_v46, %v3852_v34  ;;  %v1851_v38 = vpop.f32.mrb[81].mxu1 }
 0x563   :  { %v1852_v41 = vadd.f32 %v3852_v34, %v1851_v38 }
 0x564   :  { %1923 = vst [vmem:[#allocation5 + $0xb8] sm:$0xff] %v1857_v16 }
 0x565   :  { %1922 = vst [vmem:[#allocation5 + $0xb0] sm:$0xff] %v1852_v41  ;;  %v2708_v57 = vpop.f32.mrb[82].mxu1 }
 0x566   :  { %v1867_v28 = vadd.f32 %v2708_v57, %v3852_v34  ;;  %v1861_v48 = vpop.f32.mrb[83].mxu1 }
 0x567   :  { %v1862_v7 = vadd.f32 %v3852_v34, %v1861_v48 }
 0x568   :  { %1925 = vst [vmem:[#allocation5 + $0xc8] sm:$0xff] %v1867_v28 }
 0x569   :  { %1924 = vst [vmem:[#allocation5 + $0xc0] sm:$0xff] %v1862_v7  ;;  %v2711_v60 = vpop.f32.mrb[84].mxu1 }
 0x56a   :  { %v1877_v36 = vadd.f32 %v2711_v60, %v3852_v34  ;;  %v1871_v24 = vpop.f32.mrb[85].mxu1 }
 0x56b   :  { %v1872_v8 = vadd.f32 %v3852_v34, %v1871_v24 }
 0x56c   :  { %1927 = vst [vmem:[#allocation5 + $0xd8] sm:$0xff] %v1877_v36 }
 0x56d   :  { %1926 = vst [vmem:[#allocation5 + $0xd0] sm:$0xff] %v1872_v8  ;;  %v2714_v1 = vpop.f32.mrb[86].mxu1 }
 0x56e   :  { %v1887_v50 = vadd.f32 %v2714_v1, %v3852_v34  ;;  %v1881_v4 = vpop.f32.mrb[87].mxu1 }
 0x56f   :  { %v1882_v53 = vadd.f32 %v3852_v34, %v1881_v4 }
 0x570   :  { %1929 = vst [vmem:[#allocation5 + $0xe8] sm:$0xff] %v1887_v50 }
 0x571   :  { %1928 = vst [vmem:[#allocation5 + $0xe0] sm:$0xff] %v1882_v53  ;;  %v2717_v0 = vpop.f32.mrb[88].mxu1 }
 0x572   :  { %v1897_v61 = vadd.f32 %v2717_v0, %v3852_v34  ;;  %v1891_v9 = vpop.f32.mrb[89].mxu1 }
 0x573   :  { %v1892_v6 = vadd.f32 %v3852_v34, %v1891_v9 }
 0x574   :  { %1931 = vst [vmem:[#allocation5 + $0xf8] sm:$0xff] %v1897_v61 }
 0x575   :  { %1930 = vst [vmem:[#allocation5 + $0xf0] sm:$0xff] %v1892_v6 }
 0x576   :  { %2935 = shalt.err (!%p2932_p12)
}
 0x577   :  { %s2936_s8 = scalar_lea.hbm %s3905_s4, 4096 }
 0x578   :  { %p2937_p13 = scmp.ne.s32.totalorder %s3905_s4, %s2936_s8  ;;  %p2940_p0 = scmp.lt.u32.totalorder %s2936_s8, %s3905_s4 }
 0x57a   :  { %p2942_p1 = pnand %p2940_p0, %p2937_p13 }
 0x57c   :  { %2945 = shalt.err (!%p2942_p1)
}
 0x57d   :  { %1943 = dma.vmem_to_hbm [thread:$0]  %s1938_s30, 4096, %s3905_s4, [#allocation4], %s2951_s25, %s2951_s25, %s2952_s26  }
 0x57e   :  { %2948 = dma.done.wait [#allocation4], 4096  }
 0x57f   :  { %2949 = vsyncadd [#allocation4], 4294963200 }
 0x580   :  { %1947 = vsyncpa [#allocation3], 1 }
 0x581   :  { %1948 = vsyncpa [#allocation4], 1 }

</bundles_post_ra>
